<compile_context>
chip_gen: v7x
topology: tpu7x:2x2x1
jax: 0.10.0
libtpu: 0.0.40
codegen_flags: <defaults>
</compile_context>

<pallas_src>
import functools

import numpy as np
import jax
import jax.numpy as jnp
from jax import lax
from jax.experimental import pallas as pl
from jax.experimental.pallas import tpu as pltpu


# ----------------------------------------------------------------------------
# Fused forward kernel (one grid step == one graph; everything in VMEM)
# ----------------------------------------------------------------------------
def _fused_forward_kernel(*refs, steps, skip, aggr, use_node_update_mlp,
                          emb_end_relu, layer_counts, mxu_dtype):
    (n_node_emb, n_edge_emb, n_edge_mlp, n_node_mlp, n_cls) = layer_counts
    it = iter(refs)
    x_ref = next(it)          # (N, NODE_INPUT_DIM)
    ea_ref = next(it)         # (E, EDGE_INPUT_DIM)
    gidx_ref = next(it)       # (2E, 1) int32: [dst indices ; src indices]
    dst_row_ref = next(it)    # (1, E) int32
    emask_ref = next(it)      # (1, E) f32: 1.0 where edge_labels == 1.0
    maskf_ref = next(it)      # (1, EDGE_INPUT_DIM)

    def take_layers(n):
        return [(next(it), next(it)) for _ in range(n)]

    node_emb = take_layers(n_node_emb)
    edge_emb = take_layers(n_edge_emb)

    # edge-MLP first layer, pre-split by the wrapper into per-step / loop-invariant rows
    e_w_cur = next(it)
    e_b1 = next(it)
    e_w_init = next(it) if skip else None
    edge_mlp_rest = take_layers(n_edge_mlp - 1)

    if use_node_update_mlp:
        n_w_cur = next(it)
        n_b1 = next(it)
        n_w_init = next(it) if skip else None
        node_mlp_rest = take_layers(n_node_mlp - 1)

    cls_mlp = take_layers(n_cls)
    out_ref = next(it)        # (N, out_pad) lane-dense padded logits

    n_nodes = x_ref.shape[0]
    n_edges = ea_ref.shape[0]
    f32 = jnp.float32

    def dot(a, b):
        # MXU matmul: optionally bf16 operands (v6e/v7x), always f32 accumulation.
        return jnp.dot(a.astype(mxu_dtype), b.astype(mxu_dtype),
                       preferred_element_type=f32)

    def run_mlp(layers, h, end_relu):
        n = len(layers)
        for i, (w_ref, b_ref) in enumerate(layers):
            h = dot(h, w_ref[...]) + b_ref[...]
            if i < n - 1 or end_relu:
                h = jnp.maximum(h, 0.0)
        return h

    # ---- embeddings (VPU epilogue stays f32) --------------------------------
    edge_attr = ea_ref[...] * maskf_ref[...]
    node_cur = run_mlp(node_emb, x_ref[...], emb_end_relu)
    edge_cur = run_mlp(edge_emb, edge_attr, emb_end_relu)
    node_init = node_cur
    edge_init = edge_cur

    # ---- stacked gather / masked scatter one-hots (loop invariant) ----------
    iota2 = lax.broadcasted_iota(jnp.int32, (2 * n_edges, n_nodes), 1)
    gmat = (iota2 == gidx_ref[...]).astype(f32)          # (2E, N): [dst-gather ; src-gather]
    iota_ne = lax.broadcasted_iota(jnp.int32, (n_nodes, n_edges), 0)
    scatter = (iota_ne == dst_row_ref[...]).astype(f32) * emask_ref[...]   # (N, E)
    if aggr == "mean":
        # fold the inverse degree into the scatter rows -> no per-step rescale
        inv_deg = 1.0 / jnp.maximum(jnp.sum(scatter, axis=1, keepdims=True), 1.0)
        scatter = scatter * inv_deg
    gmat = gmat.astype(mxu_dtype)         # exact in bf16 (0/1 entries)
    scatter_m = scatter.astype(mxu_dtype)

    # ---- hoist loop-invariant skip-block work into effective biases ---------
    if skip:
        g_init = dot(gmat, node_init)                                  # (2E, nd)
        init_in = jnp.concatenate(
            [g_init[:n_edges], g_init[n_edges:], edge_init], axis=1)   # (E, 2nd+ed)
        e_bias = e_b1[...] + dot(init_in, e_w_init[...])               # (E, hidden)
        if use_node_update_mlp:
            n_bias = n_b1[...] + dot(node_init, n_w_init[...])         # (N, out)
    else:
        e_bias = e_b1[...]
        if use_node_update_mlp:
            n_bias = n_b1[...]

    relu_edge1 = n_edge_mlp > 1
    relu_node1 = n_node_mlp > 1

    # ---- message-passing steps (STEPS is static -> unrolled at trace time) --
    for _ in range(steps):
        # one stacked gather matmul yields both x_i (= node[dst]) and x_j (= node[src])
        g_cur = dot(gmat, node_cur)                                    # (2E, nd)
        cur_in = jnp.concatenate(
            [g_cur[:n_edges], g_cur[n_edges:], edge_cur], axis=1)      # (E, 2nd+ed)
        h = dot(cur_in, e_w_cur[...]) + e_bias                         # single fused-K matmul
        if relu_edge1:
            h = jnp.maximum(h, 0.0)
        new_edge = run_mlp(edge_mlp_rest, h, end_relu=False)
        # masked (and mean-normalized) scatter-add of messages onto target nodes
        agg = dot(scatter_m, new_edge)                                 # (N, edge_dim)
        if use_node_update_mlp:
            nh = dot(jnp.concatenate([node_cur, agg], axis=1), n_w_cur[...]) + n_bias
            if relu_node1:
                nh = jnp.maximum(nh, 0.0)
            node_cur = run_mlp(node_mlp_rest, nh, end_relu=False)
        else:
            # TODO(synk): MPLayer source not provided; residual-add fallback.
            base = node_init if skip else node_cur
            node_cur = base[:, : agg.shape[1]] + agg
        edge_cur = new_edge

    # ---- classification head (lane-dense padded output) ---------------------
    logits = run_mlp(cls_mlp, node_cur, end_relu=False)
    out_ref[...] = logits.astype(out_ref.dtype)


# ----------------------------------------------------------------------------
# JAX wrapper: one jitted function, one pallas_call for a whole batch of graphs
# ----------------------------------------------------------------------------
def make_forward(cfg, mxu_bf16=False):
    class_out = cfg["CLASS_OUTPUT_SIZES"][-1]
    nd = cfg["NODE_FEATURE_DIM"]
    ed = cfg["EDGE_FEATURE_DIM"]
    skip = cfg["SKIP"]
    use_numlp = cfg["USE_NODE_UPDATE_MLP"]
    mxu_dtype = jnp.bfloat16 if mxu_bf16 else jnp.float32

    def forward(params, x, edge_attr, edge_index, edge_labels, node_labels):
        B, N, _ = x.shape
        E = edge_attr.shape[1]

        dst = edge_index[:, 1, :].astype(jnp.int32)
        src = edge_index[:, 0, :].astype(jnp.int32)
        gidx = jnp.concatenate([dst, src], axis=1)[..., None]          # (B, 2E, 1)
        dst_row = dst[:, None, :]                                      # (B, 1, E)
        emask = (edge_labels == 1.0).astype(jnp.float32)[:, None, :]   # (B, 1, E)

        flat = []
        for (w, b) in params["node_embedding"]:
            flat += [w, b]
        for (w, b) in params["edge_embedding"]:
            flat += [w, b]

        # edge-MLP first layer: split weight rows into per-step (cur) / hoisted (init)
        (w1, b1), *edge_rest = params["mpn"]["edge_mlp"]
        if skip:
            w1_cur = jnp.concatenate([w1[nd:2 * nd], w1[3 * nd:4 * nd],
                                      w1[4 * nd + ed:]], axis=0)
            w1_init = jnp.concatenate([w1[:nd], w1[2 * nd:3 * nd],
                                       w1[4 * nd:4 * nd + ed]], axis=0)
            flat += [w1_cur, b1, w1_init]
        else:
            flat += [w1, b1]
        for (w, b) in edge_rest:
            flat += [w, b]

        if use_numlp:
            (wn, bn), *node_rest = params["mpn"]["node_mlp"]
            if skip:
                flat += [wn[nd:], bn, wn[:nd]]
            else:
                flat += [wn, bn]
            for (w, b) in node_rest:
                flat += [w, b]
            n_node_mlp = len(params["mpn"]["node_mlp"])
        else:
            n_node_mlp = 0

        for (w, b) in params["classification"]:
            flat += [w, b]

        layer_counts = (len(params["node_embedding"]),
                        len(params["edge_embedding"]),
                        len(params["mpn"]["edge_mlp"]),
                        n_node_mlp,
                        len(params["classification"]))
        out_pad = params["classification"][-1][0].shape[1]   # lane-padded width

        kernel = functools.partial(
            _fused_forward_kernel,
            steps=cfg["STEPS"], skip=skip, aggr=cfg["AGGR"],
            use_node_update_mlp=use_numlp,
            emb_end_relu=cfg["NODE_EMB_END_WITH_RELU"],
            layer_counts=layer_counts, mxu_dtype=mxu_dtype)

        def per_graph(a):      # tile over the graph-batch grid axis (squeezed)
            return pl.BlockSpec((None,) + a.shape[1:],
                                lambda b: (b,) + (0,) * (a.ndim - 1))

        def resident(a):       # constant block index -> DMA'd once, stays in VMEM
            n_dims = a.ndim
            return pl.BlockSpec(a.shape, lambda b, _n=n_dims: (0,) * _n)

        data_in = [x, edge_attr, gidx, dst_row, emask]
        in_specs = ([per_graph(a) for a in data_in]
                    + [resident(params["mask_features"])]
                    + [resident(a) for a in flat])

        logits = pl.pallas_call(
            kernel,
            grid=(B,),
            out_shape=jax.ShapeDtypeStruct((B, N, out_pad), jnp.float32),
            in_specs=in_specs,
            out_specs=pl.BlockSpec((None, N, out_pad), lambda b: (b, 0, 0)),
            compiler_params=pltpu.CompilerParams(
                dimension_semantics=("parallel",)),
        )(*data_in, params["mask_features"], *flat)

        preds_node = [jnp.zeros_like(node_labels, dtype=jnp.float32)]
        preds_class = [logits[:, :, :class_out]]
        preds_edge = [jnp.zeros_like(edge_labels, dtype=jnp.float32)]
        return preds_edge, preds_node, preds_class

    return jax.jit(forward)


# ----------------------------------------------------------------------------
# Parameter construction (deterministic, in-script)
# ----------------------------------------------------------------------------
def init_linear(key, in_dim, out_dim):
    kw, kb = jax.random.split(key)
    w = jax.random.normal(kw, (in_dim, out_dim), jnp.float32) / np.sqrt(in_dim)
    b = 0.01 * jax.random.normal(kb, (1, out_dim), jnp.float32)
    return (w, b)


def init_mlp(key, in_dim, output_sizes):
    dims = [in_dim] + list(output_sizes)
    keys = jax.random.split(key, len(output_sizes))
    return [init_linear(keys[i], dims[i], dims[i + 1])
            for i in range(len(output_sizes))]


def init_params(key, cfg):
    k1, k2, k3, k4, k5 = jax.random.split(key, 5)
    nf = 2 if cfg["SKIP"] else 1   # skip-connection concat factor
    edge_mlp_in = 2 * cfg["NODE_FEATURE_DIM"] * nf + cfg["EDGE_FEATURE_DIM"] * nf
    node_mlp_in = cfg["NODE_FEATURE_DIM"] * nf + cfg["EDGE_FEATURE_DIM"]

    classification = init_mlp(k3, cfg["NODE_FEATURE_DIM"], cfg["CLASS_OUTPUT_SIZES"])
    # lane-dense output: zero-pad the head's last layer to a multiple of 128 cols
    w_last, b_last = classification[-1]
    pad = (-w_last.shape[1]) % 128
    if pad:
        w_last = jnp.pad(w_last, ((0, 0), (0, pad)))
        b_last = jnp.pad(b_last, ((0, 0), (0, pad)))
    classification[-1] = (w_last, b_last)

    return {
        "mask_features": jnp.ones((1, cfg["EDGE_INPUT_DIM"]), jnp.float32),
        "node_embedding": init_mlp(k1, cfg["NODE_INPUT_DIM"],
                                   cfg["NODE_EMB_OUTPUT_SIZES"]),
        "edge_embedding": init_mlp(k2, cfg["EDGE_INPUT_DIM"],
                                   cfg["EDGE_EMB_OUTPUT_SIZES"]),
        "classification": classification,
        "mpn": {
            "edge_mlp": init_mlp(k4, edge_mlp_in,
                                 [cfg["EDGE_FEATURE_HIDDEN"],
                                  cfg["EDGE_FEATURE_DIM"]]),
            "node_mlp": init_mlp(k5, node_mlp_in, [cfg["NODE_FEATURE_DIM"]]),
        },
    }


# ----------------------------------------------------------------------------
# Pure-JAX per-graph reference with the ORIGINAL dynamic-filter semantics
# ----------------------------------------------------------------------------
def reference_forward(params, cfg, x, edge_attr, edge_index, edge_labels):
    HI = jax.lax.Precision.HIGHEST

    def mlp(layers, h, end_relu=False):
        n = len(layers)
        for i, (w, b) in enumerate(layers):
            h = jnp.dot(h, w, precision=HI) + b
            if i < n - 1 or end_relu:
                h = jnp.maximum(h, 0.0)
        return h

    sel = np.asarray(edge_labels) == 1.0
    ei = jnp.asarray(np.asarray(edge_index)[:, sel])
    src, dst = ei[0], ei[1]

    edge_attr = edge_attr * params["mask_features"]
    node_f = mlp(params["node_embedding"], x, cfg["NODE_EMB_END_WITH_RELU"])
    edge_all = mlp(params["edge_embedding"], edge_attr, cfg["NODE_EMB_END_WITH_RELU"])
    edge_f = jnp.asarray(np.asarray(edge_all)[sel])
    node_init, edge_init = node_f, edge_f

    for _ in range(cfg["STEPS"]):
        if cfg["SKIP"]:
            node_f = jnp.concatenate([node_init, node_f], axis=1)
            edge_f = jnp.concatenate([edge_init, edge_f], axis=1)
        x_i = node_f[dst]
        x_j = node_f[src]
        edge_in = jnp.concatenate([x_i, x_j, edge_f], axis=1)
        new_edge = mlp(params["mpn"]["edge_mlp"], edge_in)
        agg = jnp.zeros((x.shape[0], new_edge.shape[1]), jnp.float32).at[dst].add(new_edge)
        if cfg["AGGR"] == "mean":
            deg = jnp.zeros((x.shape[0],), jnp.float32).at[dst].add(
                jnp.ones((new_edge.shape[0],), jnp.float32))
            agg = agg / jnp.maximum(deg, 1.0)[:, None]
        if cfg["USE_NODE_UPDATE_MLP"]:
            node_f = mlp(params["mpn"]["node_mlp"],
                         jnp.concatenate([node_f, agg], axis=1))
        else:
            node_f = node_f[:, : agg.shape[1]] + agg
        edge_f = new_edge

    logits = mlp(params["classification"], node_f)
    return logits[:, : cfg["CLASS_OUTPUT_SIZES"][-1]]


if __name__ == "__main__":
    cfg = dict(
        SKIP=True,
        AGGR="add",
        USE_NODE_UPDATE_MLP=True,
        STEPS=2,
        NODE_INPUT_DIM=32,
        EDGE_INPUT_DIM=16,
        NODE_FEATURE_DIM=32,
        EDGE_FEATURE_DIM=32,
        EDGE_FEATURE_HIDDEN=64,
        NODE_EMB_OUTPUT_SIZES=[64, 32],
        EDGE_EMB_OUTPUT_SIZES=[64, 32],
        CLASS_OUTPUT_SIZES=[64, 17],
        NODE_EMB_END_WITH_RELU=True,
    )

    key = jax.random.PRNGKey(0)
    kp, kx, ke, ki, kn = jax.random.split(key, 5)

    B, N_NODES, N_EDGES = 2, 24, 64   # batch of 2 graphs -> parallel grid axis
    x = jax.random.normal(kx, (B, N_NODES, cfg["NODE_INPUT_DIM"]), jnp.float32)
    edge_attr = jax.random.normal(ke, (B, N_EDGES, cfg["EDGE_INPUT_DIM"]), jnp.float32)
    edge_index = jax.random.randint(ki, (B, 2, N_EDGES), 0, N_NODES, jnp.int32)
    # deterministic labels: graph 0 keeps every 2nd edge, graph 1 every 3rd
    edge_labels = (jnp.arange(N_EDGES)[None, :] %
                   (jnp.arange(B)[:, None] + 2) == 0).astype(jnp.float32)
    node_labels = jax.random.randint(kn, (B, N_NODES), 0, 17).astype(jnp.float32)

    params = init_params(kp, cfg)

    # f32 MXU operands (v5e-friendly, tight check) and bf16 operands (v6e/v7x,
    # deliberately looser check — reduced-precision MXU path per perf review).
    for mxu_bf16, tol in [(False, 5e-3), (True, 1e-1)]:
        forward = make_forward(cfg, mxu_bf16=mxu_bf16)
        preds_edge, preds_node, preds_class = forward(
            params, x, edge_attr, edge_index, edge_labels, node_labels)
        jax.block_until_ready(preds_class[0])
        jax.block_until_ready(preds_node[0])
        jax.block_until_ready(preds_edge[0])

        for g in range(B):
            ref = reference_forward(params, cfg, x[g], edge_attr[g],
                                    edge_index[g], edge_labels[g])
            np.testing.assert_allclose(np.asarray(preds_class[0][g]),
                                       np.asarray(ref), rtol=tol, atol=tol)

        assert preds_class[0].shape == (B, N_NODES, cfg["CLASS_OUTPUT_SIZES"][-1])
        assert preds_node[0].shape == node_labels.shape
        assert preds_edge[0].shape == edge_labels.shape

    print("KERNEL_OK")
</pallas_src>

<mosaic_0001>
module attributes {stable_mosaic.version = 11 : i64} {
  func.func @_fused_forward_kernel(%arg0: i32, %arg1: memref<1x24x32xf32, #tpu.memory_space<vmem>>, %arg2: memref<1x64x16xf32, #tpu.memory_space<vmem>>, %arg3: memref<1x128x1xi32, #tpu.memory_space<vmem>>, %arg4: memref<1x1x64xi32, #tpu.memory_space<vmem>>, %arg5: memref<1x1x64xf32, #tpu.memory_space<vmem>>, %arg6: memref<1x16xf32, #tpu.memory_space<vmem>>, %arg7: memref<32x64xf32, #tpu.memory_space<vmem>>, %arg8: memref<1x64xf32, #tpu.memory_space<vmem>>, %arg9: memref<64x32xf32, #tpu.memory_space<vmem>>, %arg10: memref<1x32xf32, #tpu.memory_space<vmem>>, %arg11: memref<16x64xf32, #tpu.memory_space<vmem>>, %arg12: memref<1x64xf32, #tpu.memory_space<vmem>>, %arg13: memref<64x32xf32, #tpu.memory_space<vmem>>, %arg14: memref<1x32xf32, #tpu.memory_space<vmem>>, %arg15: memref<96x64xf32, #tpu.memory_space<vmem>>, %arg16: memref<1x64xf32, #tpu.memory_space<vmem>>, %arg17: memref<96x64xf32, #tpu.memory_space<vmem>>, %arg18: memref<64x32xf32, #tpu.memory_space<vmem>>, %arg19: memref<1x32xf32, #tpu.memory_space<vmem>>, %arg20: memref<64x32xf32, #tpu.memory_space<vmem>>, %arg21: memref<1x32xf32, #tpu.memory_space<vmem>>, %arg22: memref<32x32xf32, #tpu.memory_space<vmem>>, %arg23: memref<32x64xf32, #tpu.memory_space<vmem>>, %arg24: memref<1x64xf32, #tpu.memory_space<vmem>>, %arg25: memref<64x128xf32, #tpu.memory_space<vmem>>, %arg26: memref<1x128xf32, #tpu.memory_space<vmem>>, %arg27: memref<1x24x128xf32, #tpu.memory_space<vmem>>) attributes {dimension_semantics = [#tpu.dimension_semantics<parallel>], iteration_bounds = array<i64: 2>, scalar_prefetch = 0 : i64, scratch_operands = 0 : i64, tpu.core_type = #tpu.core_type<tc>, window_params = [{transform_indices = @transform_0, window_bounds = array<i64: 1, 24, 32>}, {transform_indices = @transform_1, window_bounds = array<i64: 1, 64, 16>}, {transform_indices = @transform_2, window_bounds = array<i64: 1, 128, 1>}, {transform_indices = @transform_3, window_bounds = array<i64: 1, 1, 64>}, {transform_indices = @transform_4, window_bounds = array<i64: 1, 1, 64>}, {pipeline_mode = #tpu.pipeline_mode<synchronous>, transform_indices = @transform_5, window_bounds = array<i64: 1, 16>}, {pipeline_mode = #tpu.pipeline_mode<synchronous>, transform_indices = @transform_6, window_bounds = array<i64: 32, 64>}, {pipeline_mode = #tpu.pipeline_mode<synchronous>, transform_indices = @transform_7, window_bounds = array<i64: 1, 64>}, {pipeline_mode = #tpu.pipeline_mode<synchronous>, transform_indices = @transform_8, window_bounds = array<i64: 64, 32>}, {pipeline_mode = #tpu.pipeline_mode<synchronous>, transform_indices = @transform_9, window_bounds = array<i64: 1, 32>}, {pipeline_mode = #tpu.pipeline_mode<synchronous>, transform_indices = @transform_10, window_bounds = array<i64: 16, 64>}, {pipeline_mode = #tpu.pipeline_mode<synchronous>, transform_indices = @transform_11, window_bounds = array<i64: 1, 64>}, {pipeline_mode = #tpu.pipeline_mode<synchronous>, transform_indices = @transform_12, window_bounds = array<i64: 64, 32>}, {pipeline_mode = #tpu.pipeline_mode<synchronous>, transform_indices = @transform_13, window_bounds = array<i64: 1, 32>}, {pipeline_mode = #tpu.pipeline_mode<synchronous>, transform_indices = @transform_14, window_bounds = array<i64: 96, 64>}, {pipeline_mode = #tpu.pipeline_mode<synchronous>, transform_indices = @transform_15, window_bounds = array<i64: 1, 64>}, {pipeline_mode = #tpu.pipeline_mode<synchronous>, transform_indices = @transform_16, window_bounds = array<i64: 96, 64>}, {pipeline_mode = #tpu.pipeline_mode<synchronous>, transform_indices = @transform_17, window_bounds = array<i64: 64, 32>}, {pipeline_mode = #tpu.pipeline_mode<synchronous>, transform_indices = @transform_18, window_bounds = array<i64: 1, 32>}, {pipeline_mode = #tpu.pipeline_mode<synchronous>, transform_indices = @transform_19, window_bounds = array<i64: 64, 32>}, {pipeline_mode = #tpu.pipeline_mode<synchronous>, transform_indices = @transform_20, window_bounds = array<i64: 1, 32>}, {pipeline_mode = #tpu.pipeline_mode<synchronous>, transform_indices = @transform_21, window_bounds = array<i64: 32, 32>}, {pipeline_mode = #tpu.pipeline_mode<synchronous>, transform_indices = @transform_22, window_bounds = array<i64: 32, 64>}, {pipeline_mode = #tpu.pipeline_mode<synchronous>, transform_indices = @transform_23, window_bounds = array<i64: 1, 64>}, {pipeline_mode = #tpu.pipeline_mode<synchronous>, transform_indices = @transform_24, window_bounds = array<i64: 64, 128>}, {pipeline_mode = #tpu.pipeline_mode<synchronous>, transform_indices = @transform_25, window_bounds = array<i64: 1, 128>}, {transform_indices = @transform_26, window_bounds = array<i64: 1, 24, 128>}]} {
    %c0 = arith.constant 0 : index
    %c0_0 = arith.constant 0 : index
    %c0_1 = arith.constant 0 : index
    %0 = vector.load %arg2[%c0, %c0_0, %c0_1] : memref<1x64x16xf32, #tpu.memory_space<vmem>>, vector<1x64x16xf32>
    %1 = vector.shape_cast %0 : vector<1x64x16xf32> to vector<64x16xf32>
    %c0_2 = arith.constant 0 : index
    %c0_3 = arith.constant 0 : index
    %2 = vector.load %arg6[%c0_2, %c0_3] : memref<1x16xf32, #tpu.memory_space<vmem>>, vector<1x16xf32>
    %3 = vector.broadcast %2 : vector<1x16xf32> to vector<64x16xf32>
    %4 = arith.mulf %1, %3 : vector<64x16xf32>
    %c0_4 = arith.constant 0 : index
    %c0_5 = arith.constant 0 : index
    %c0_6 = arith.constant 0 : index
    %5 = vector.load %arg1[%c0_4, %c0_5, %c0_6] : memref<1x24x32xf32, #tpu.memory_space<vmem>>, vector<1x24x32xf32>
    %6 = vector.shape_cast %5 : vector<1x24x32xf32> to vector<24x32xf32>
    %c0_7 = arith.constant 0 : index
    %c0_8 = arith.constant 0 : index
    %7 = vector.load %arg7[%c0_7, %c0_8] : memref<32x64xf32, #tpu.memory_space<vmem>>, vector<32x64xf32>
    %cst = arith.constant dense<0.000000e+00> : vector<24x64xf32>
    %8 = tpu.matmul %6, %7, %cst {dimension_numbers = #tpu.dot_dimension_numbers<[1], [0], [0], [1], [0, 0, 1, 1], [], []>} : vector<24x32xf32>, vector<32x64xf32>, vector<24x64xf32> -> vector<24x64xf32>
    %c0_9 = arith.constant 0 : index
    %c0_10 = arith.constant 0 : index
    %9 = vector.load %arg8[%c0_9, %c0_10] : memref<1x64xf32, #tpu.memory_space<vmem>>, vector<1x64xf32>
    %10 = vector.broadcast %9 : vector<1x64xf32> to vector<24x64xf32>
    %11 = arith.addf %8, %10 : vector<24x64xf32>
    %cst_11 = arith.constant 0.000000e+00 : f32
    %12 = vector.broadcast %cst_11 : f32 to vector<24x64xf32>
    %13 = arith.maximumf %11, %12 : vector<24x64xf32>
    %c0_12 = arith.constant 0 : index
    %c0_13 = arith.constant 0 : index
    %14 = vector.load %arg9[%c0_12, %c0_13] : memref<64x32xf32, #tpu.memory_space<vmem>>, vector<64x32xf32>
    %cst_14 = arith.constant dense<0.000000e+00> : vector<24x32xf32>
    %15 = tpu.matmul %13, %14, %cst_14 {dimension_numbers = #tpu.dot_dimension_numbers<[1], [0], [0], [1], [0, 0, 1, 1], [], []>} : vector<24x64xf32>, vector<64x32xf32>, vector<24x32xf32> -> vector<24x32xf32>
    %c0_15 = arith.constant 0 : index
    %c0_16 = arith.constant 0 : index
    %16 = vector.load %arg10[%c0_15, %c0_16] : memref<1x32xf32, #tpu.memory_space<vmem>>, vector<1x32xf32>
    %17 = vector.broadcast %16 : vector<1x32xf32> to vector<24x32xf32>
    %18 = arith.addf %15, %17 : vector<24x32xf32>
    %cst_17 = arith.constant 0.000000e+00 : f32
    %19 = vector.broadcast %cst_17 : f32 to vector<24x32xf32>
    %20 = arith.maximumf %18, %19 : vector<24x32xf32>
    %c0_18 = arith.constant 0 : index
    %c0_19 = arith.constant 0 : index
    %21 = vector.load %arg11[%c0_18, %c0_19] : memref<16x64xf32, #tpu.memory_space<vmem>>, vector<16x64xf32>
    %cst_20 = arith.constant dense<0.000000e+00> : vector<64x64xf32>
    %22 = tpu.matmul %4, %21, %cst_20 {dimension_numbers = #tpu.dot_dimension_numbers<[1], [0], [0], [1], [0, 0, 1, 1], [], []>} : vector<64x16xf32>, vector<16x64xf32>, vector<64x64xf32> -> vector<64x64xf32>
    %c0_21 = arith.constant 0 : index
    %c0_22 = arith.constant 0 : index
    %23 = vector.load %arg12[%c0_21, %c0_22] : memref<1x64xf32, #tpu.memory_space<vmem>>, vector<1x64xf32>
    %24 = vector.broadcast %23 : vector<1x64xf32> to vector<64x64xf32>
    %25 = arith.addf %22, %24 : vector<64x64xf32>
    %cst_23 = arith.constant 0.000000e+00 : f32
    %26 = vector.broadcast %cst_23 : f32 to vector<64x64xf32>
    %27 = arith.maximumf %25, %26 : vector<64x64xf32>
    %c0_24 = arith.constant 0 : index
    %c0_25 = arith.constant 0 : index
    %28 = vector.load %arg13[%c0_24, %c0_25] : memref<64x32xf32, #tpu.memory_space<vmem>>, vector<64x32xf32>
    %cst_26 = arith.constant dense<0.000000e+00> : vector<64x32xf32>
    %29 = tpu.matmul %27, %28, %cst_26 {dimension_numbers = #tpu.dot_dimension_numbers<[1], [0], [0], [1], [0, 0, 1, 1], [], []>} : vector<64x64xf32>, vector<64x32xf32>, vector<64x32xf32> -> vector<64x32xf32>
    %c0_27 = arith.constant 0 : index
    %c0_28 = arith.constant 0 : index
    %30 = vector.load %arg14[%c0_27, %c0_28] : memref<1x32xf32, #tpu.memory_space<vmem>>, vector<1x32xf32>
    %31 = vector.broadcast %30 : vector<1x32xf32> to vector<64x32xf32>
    %32 = arith.addf %29, %31 : vector<64x32xf32>
    %cst_29 = arith.constant 0.000000e+00 : f32
    %33 = vector.broadcast %cst_29 : f32 to vector<64x32xf32>
    %34 = arith.maximumf %32, %33 : vector<64x32xf32>
    %35 = tpu.iota {dimensions = array<i32: 1>} : vector<128x24xi32>
    %c0_30 = arith.constant 0 : index
    %c0_31 = arith.constant 0 : index
    %c0_32 = arith.constant 0 : index
    %36 = vector.load %arg3[%c0_30, %c0_31, %c0_32] : memref<1x128x1xi32, #tpu.memory_space<vmem>>, vector<1x128x1xi32>
    %37 = vector.shape_cast %36 : vector<1x128x1xi32> to vector<128x1xi32>
    %38 = vector.broadcast %37 : vector<128x1xi32> to vector<128x24xi32>
    %39 = arith.cmpi eq, %35, %38 : vector<128x24xi32>
    %40 = arith.extui %39 : vector<128x24xi1> to vector<128x24xi32>
    %41 = arith.sitofp %40 : vector<128x24xi32> to vector<128x24xf32>
    %42 = tpu.iota {dimensions = array<i32: 0>} : vector<24x64xi32>
    %c0_33 = arith.constant 0 : index
    %c0_34 = arith.constant 0 : index
    %c0_35 = arith.constant 0 : index
    %43 = vector.load %arg4[%c0_33, %c0_34, %c0_35] : memref<1x1x64xi32, #tpu.memory_space<vmem>>, vector<1x1x64xi32>
    %44 = vector.shape_cast %43 : vector<1x1x64xi32> to vector<1x64xi32>
    %45 = vector.broadcast %44 : vector<1x64xi32> to vector<24x64xi32>
    %46 = arith.cmpi eq, %42, %45 : vector<24x64xi32>
    %47 = arith.extui %46 : vector<24x64xi1> to vector<24x64xi32>
    %48 = arith.sitofp %47 : vector<24x64xi32> to vector<24x64xf32>
    %c0_36 = arith.constant 0 : index
    %c0_37 = arith.constant 0 : index
    %c0_38 = arith.constant 0 : index
    %49 = vector.load %arg5[%c0_36, %c0_37, %c0_38] : memref<1x1x64xf32, #tpu.memory_space<vmem>>, vector<1x1x64xf32>
    %50 = vector.shape_cast %49 : vector<1x1x64xf32> to vector<1x64xf32>
    %51 = vector.broadcast %50 : vector<1x64xf32> to vector<24x64xf32>
    %52 = arith.mulf %48, %51 : vector<24x64xf32>
    %cst_39 = arith.constant dense<0.000000e+00> : vector<128x32xf32>
    %53 = tpu.matmul %41, %20, %cst_39 {dimension_numbers = #tpu.dot_dimension_numbers<[1], [0], [0], [1], [0, 0, 1, 1], [], []>} : vector<128x24xf32>, vector<24x32xf32>, vector<128x32xf32> -> vector<128x32xf32>
    %54 = vector.extract_strided_slice %53 {offsets = [0, 0], sizes = [64, 32], strides = [1, 1]} : vector<128x32xf32> to vector<64x32xf32>
    %55 = vector.extract_strided_slice %53 {offsets = [64, 0], sizes = [64, 32], strides = [1, 1]} : vector<128x32xf32> to vector<64x32xf32>
    %56 = tpu.concatenate %54, %55, %34 in 1 : vector<64x32xf32>, vector<64x32xf32>, vector<64x32xf32> -> vector<64x96xf32>
    %c0_40 = arith.constant 0 : index
    %c0_41 = arith.constant 0 : index
    %57 = vector.load %arg16[%c0_40, %c0_41] : memref<1x64xf32, #tpu.memory_space<vmem>>, vector<1x64xf32>
    %c0_42 = arith.constant 0 : index
    %c0_43 = arith.constant 0 : index
    %58 = vector.load %arg17[%c0_42, %c0_43] : memref<96x64xf32, #tpu.memory_space<vmem>>, vector<96x64xf32>
    %cst_44 = arith.constant dense<0.000000e+00> : vector<64x64xf32>
    %59 = tpu.matmul %56, %58, %cst_44 {dimension_numbers = #tpu.dot_dimension_numbers<[1], [0], [0], [1], [0, 0, 1, 1], [], []>} : vector<64x96xf32>, vector<96x64xf32>, vector<64x64xf32> -> vector<64x64xf32>
    %60 = vector.broadcast %57 : vector<1x64xf32> to vector<64x64xf32>
    %61 = arith.addf %60, %59 : vector<64x64xf32>
    %c0_45 = arith.constant 0 : index
    %c0_46 = arith.constant 0 : index
    %62 = vector.load %arg21[%c0_45, %c0_46] : memref<1x32xf32, #tpu.memory_space<vmem>>, vector<1x32xf32>
    %c0_47 = arith.constant 0 : index
    %c0_48 = arith.constant 0 : index
    %63 = vector.load %arg22[%c0_47, %c0_48] : memref<32x32xf32, #tpu.memory_space<vmem>>, vector<32x32xf32>
    %cst_49 = arith.constant dense<0.000000e+00> : vector<24x32xf32>
    %64 = tpu.matmul %20, %63, %cst_49 {dimension_numbers = #tpu.dot_dimension_numbers<[1], [0], [0], [1], [0, 0, 1, 1], [], []>} : vector<24x32xf32>, vector<32x32xf32>, vector<24x32xf32> -> vector<24x32xf32>
    %65 = vector.broadcast %62 : vector<1x32xf32> to vector<24x32xf32>
    %66 = arith.addf %65, %64 : vector<24x32xf32>
    %cst_50 = arith.constant dense<0.000000e+00> : vector<128x32xf32>
    %67 = tpu.matmul %41, %20, %cst_50 {dimension_numbers = #tpu.dot_dimension_numbers<[1], [0], [0], [1], [0, 0, 1, 1], [], []>} : vector<128x24xf32>, vector<24x32xf32>, vector<128x32xf32> -> vector<128x32xf32>
    %68 = vector.extract_strided_slice %67 {offsets = [0, 0], sizes = [64, 32], strides = [1, 1]} : vector<128x32xf32> to vector<64x32xf32>
    %69 = vector.extract_strided_slice %67 {offsets = [64, 0], sizes = [64, 32], strides = [1, 1]} : vector<128x32xf32> to vector<64x32xf32>
    %70 = tpu.concatenate %68, %69, %34 in 1 : vector<64x32xf32>, vector<64x32xf32>, vector<64x32xf32> -> vector<64x96xf32>
    %c0_51 = arith.constant 0 : index
    %c0_52 = arith.constant 0 : index
    %71 = vector.load %arg15[%c0_51, %c0_52] : memref<96x64xf32, #tpu.memory_space<vmem>>, vector<96x64xf32>
    %cst_53 = arith.constant dense<0.000000e+00> : vector<64x64xf32>
    %72 = tpu.matmul %70, %71, %cst_53 {dimension_numbers = #tpu.dot_dimension_numbers<[1], [0], [0], [1], [0, 0, 1, 1], [], []>} : vector<64x96xf32>, vector<96x64xf32>, vector<64x64xf32> -> vector<64x64xf32>
    %73 = arith.addf %72, %61 : vector<64x64xf32>
    %cst_54 = arith.constant 0.000000e+00 : f32
    %74 = vector.broadcast %cst_54 : f32 to vector<64x64xf32>
    %75 = arith.maximumf %73, %74 : vector<64x64xf32>
    %c0_55 = arith.constant 0 : index
    %c0_56 = arith.constant 0 : index
    %76 = vector.load %arg18[%c0_55, %c0_56] : memref<64x32xf32, #tpu.memory_space<vmem>>, vector<64x32xf32>
    %cst_57 = arith.constant dense<0.000000e+00> : vector<64x32xf32>
    %77 = tpu.matmul %75, %76, %cst_57 {dimension_numbers = #tpu.dot_dimension_numbers<[1], [0], [0], [1], [0, 0, 1, 1], [], []>} : vector<64x64xf32>, vector<64x32xf32>, vector<64x32xf32> -> vector<64x32xf32>
    %c0_58 = arith.constant 0 : index
    %c0_59 = arith.constant 0 : index
    %78 = vector.load %arg19[%c0_58, %c0_59] : memref<1x32xf32, #tpu.memory_space<vmem>>, vector<1x32xf32>
    %79 = vector.broadcast %78 : vector<1x32xf32> to vector<64x32xf32>
    %80 = arith.addf %77, %79 : vector<64x32xf32>
    %cst_60 = arith.constant dense<0.000000e+00> : vector<24x32xf32>
    %81 = tpu.matmul %52, %80, %cst_60 {dimension_numbers = #tpu.dot_dimension_numbers<[1], [0], [0], [1], [0, 0, 1, 1], [], []>} : vector<24x64xf32>, vector<64x32xf32>, vector<24x32xf32> -> vector<24x32xf32>
    %82 = tpu.concatenate %20, %81 in 1 : vector<24x32xf32>, vector<24x32xf32> -> vector<24x64xf32>
    %c0_61 = arith.constant 0 : index
    %c0_62 = arith.constant 0 : index
    %83 = vector.load %arg20[%c0_61, %c0_62] : memref<64x32xf32, #tpu.memory_space<vmem>>, vector<64x32xf32>
    %cst_63 = arith.constant dense<0.000000e+00> : vector<24x32xf32>
    %84 = tpu.matmul %82, %83, %cst_63 {dimension_numbers = #tpu.dot_dimension_numbers<[1], [0], [0], [1], [0, 0, 1, 1], [], []>} : vector<24x64xf32>, vector<64x32xf32>, vector<24x32xf32> -> vector<24x32xf32>
    %85 = arith.addf %84, %66 : vector<24x32xf32>
    %cst_64 = arith.constant dense<0.000000e+00> : vector<128x32xf32>
    %86 = tpu.matmul %41, %85, %cst_64 {dimension_numbers = #tpu.dot_dimension_numbers<[1], [0], [0], [1], [0, 0, 1, 1], [], []>} : vector<128x24xf32>, vector<24x32xf32>, vector<128x32xf32> -> vector<128x32xf32>
    %87 = vector.extract_strided_slice %86 {offsets = [0, 0], sizes = [64, 32], strides = [1, 1]} : vector<128x32xf32> to vector<64x32xf32>
    %88 = vector.extract_strided_slice %86 {offsets = [64, 0], sizes = [64, 32], strides = [1, 1]} : vector<128x32xf32> to vector<64x32xf32>
    %89 = tpu.concatenate %87, %88, %80 in 1 : vector<64x32xf32>, vector<64x32xf32>, vector<64x32xf32> -> vector<64x96xf32>
    %c0_65 = arith.constant 0 : index
    %c0_66 = arith.constant 0 : index
    %90 = vector.load %arg15[%c0_65, %c0_66] : memref<96x64xf32, #tpu.memory_space<vmem>>, vector<96x64xf32>
    %cst_67 = arith.constant dense<0.000000e+00> : vector<64x64xf32>
    %91 = tpu.matmul %89, %90, %cst_67 {dimension_numbers = #tpu.dot_dimension_numbers<[1], [0], [0], [1], [0, 0, 1, 1], [], []>} : vector<64x96xf32>, vector<96x64xf32>, vector<64x64xf32> -> vector<64x64xf32>
    %92 = arith.addf %91, %61 : vector<64x64xf32>
    %cst_68 = arith.constant 0.000000e+00 : f32
    %93 = vector.broadcast %cst_68 : f32 to vector<64x64xf32>
    %94 = arith.maximumf %92, %93 : vector<64x64xf32>
    %c0_69 = arith.constant 0 : index
    %c0_70 = arith.constant 0 : index
    %95 = vector.load %arg18[%c0_69, %c0_70] : memref<64x32xf32, #tpu.memory_space<vmem>>, vector<64x32xf32>
    %cst_71 = arith.constant dense<0.000000e+00> : vector<64x32xf32>
    %96 = tpu.matmul %94, %95, %cst_71 {dimension_numbers = #tpu.dot_dimension_numbers<[1], [0], [0], [1], [0, 0, 1, 1], [], []>} : vector<64x64xf32>, vector<64x32xf32>, vector<64x32xf32> -> vector<64x32xf32>
    %c0_72 = arith.constant 0 : index
    %c0_73 = arith.constant 0 : index
    %97 = vector.load %arg19[%c0_72, %c0_73] : memref<1x32xf32, #tpu.memory_space<vmem>>, vector<1x32xf32>
    %98 = vector.broadcast %97 : vector<1x32xf32> to vector<64x32xf32>
    %99 = arith.addf %96, %98 : vector<64x32xf32>
    %cst_74 = arith.constant dense<0.000000e+00> : vector<24x32xf32>
    %100 = tpu.matmul %52, %99, %cst_74 {dimension_numbers = #tpu.dot_dimension_numbers<[1], [0], [0], [1], [0, 0, 1, 1], [], []>} : vector<24x64xf32>, vector<64x32xf32>, vector<24x32xf32> -> vector<24x32xf32>
    %101 = tpu.concatenate %85, %100 in 1 : vector<24x32xf32>, vector<24x32xf32> -> vector<24x64xf32>
    %c0_75 = arith.constant 0 : index
    %c0_76 = arith.constant 0 : index
    %102 = vector.load %arg20[%c0_75, %c0_76] : memref<64x32xf32, #tpu.memory_space<vmem>>, vector<64x32xf32>
    %cst_77 = arith.constant dense<0.000000e+00> : vector<24x32xf32>
    %103 = tpu.matmul %101, %102, %cst_77 {dimension_numbers = #tpu.dot_dimension_numbers<[1], [0], [0], [1], [0, 0, 1, 1], [], []>} : vector<24x64xf32>, vector<64x32xf32>, vector<24x32xf32> -> vector<24x32xf32>
    %104 = arith.addf %103, %66 : vector<24x32xf32>
    %c0_78 = arith.constant 0 : index
    %c0_79 = arith.constant 0 : index
    %105 = vector.load %arg23[%c0_78, %c0_79] : memref<32x64xf32, #tpu.memory_space<vmem>>, vector<32x64xf32>
    %cst_80 = arith.constant dense<0.000000e+00> : vector<24x64xf32>
    %106 = tpu.matmul %104, %105, %cst_80 {dimension_numbers = #tpu.dot_dimension_numbers<[1], [0], [0], [1], [0, 0, 1, 1], [], []>} : vector<24x32xf32>, vector<32x64xf32>, vector<24x64xf32> -> vector<24x64xf32>
    %c0_81 = arith.constant 0 : index
    %c0_82 = arith.constant 0 : index
    %107 = vector.load %arg24[%c0_81, %c0_82] : memref<1x64xf32, #tpu.memory_space<vmem>>, vector<1x64xf32>
    %108 = vector.broadcast %107 : vector<1x64xf32> to vector<24x64xf32>
    %109 = arith.addf %106, %108 : vector<24x64xf32>
    %cst_83 = arith.constant 0.000000e+00 : f32
    %110 = vector.broadcast %cst_83 : f32 to vector<24x64xf32>
    %111 = arith.maximumf %109, %110 : vector<24x64xf32>
    %c0_84 = arith.constant 0 : index
    %c0_85 = arith.constant 0 : index
    %112 = vector.load %arg25[%c0_84, %c0_85] : memref<64x128xf32, #tpu.memory_space<vmem>>, vector<64x128xf32>
    %cst_86 = arith.constant dense<0.000000e+00> : vector<24x128xf32>
    %113 = tpu.matmul %111, %112, %cst_86 {dimension_numbers = #tpu.dot_dimension_numbers<[1], [0], [0], [1], [0, 0, 1, 1], [], []>} : vector<24x64xf32>, vector<64x128xf32>, vector<24x128xf32> -> vector<24x128xf32>
    %c0_87 = arith.constant 0 : index
    %c0_88 = arith.constant 0 : index
    %114 = vector.load %arg26[%c0_87, %c0_88] : memref<1x128xf32, #tpu.memory_space<vmem>>, vector<1x128xf32>
    %115 = vector.broadcast %114 : vector<1x128xf32> to vector<24x128xf32>
    %116 = arith.addf %113, %115 : vector<24x128xf32>
    %c0_89 = arith.constant 0 : index
    %c0_90 = arith.constant 0 : index
    %c0_91 = arith.constant 0 : index
    %117 = vector.load %arg27[%c0_89, %c0_90, %c0_91] : memref<1x24x128xf32, #tpu.memory_space<vmem>>, vector<1x24x128xf32>
    %118 = vector.shape_cast %117 : vector<1x24x128xf32> to vector<24x128xf32>
    %119 = vector.shape_cast %116 : vector<24x128xf32> to vector<1x24x128xf32>
    tpu.vector_store %arg27[%c0_89, %c0_90, %c0_91], %119 {strides = array<i32>} : memref<1x24x128xf32, #tpu.memory_space<vmem>>, vector<1x24x128xf32>,
    return
  }
  func.func @transform_0(%arg0: i32) -> (i32, i32, i32) {
    %c0_i32 = arith.constant 0 : i32
    %c0_i32_0 = arith.constant 0 : i32
    %c0_i32_1 = arith.constant 0 : i32
    return %arg0, %c0_i32, %c0_i32_0 : i32, i32, i32
  }
  func.func @transform_1(%arg0: i32) -> (i32, i32, i32) {
    %c0_i32 = arith.constant 0 : i32
    %c0_i32_0 = arith.constant 0 : i32
    %c0_i32_1 = arith.constant 0 : i32
    return %arg0, %c0_i32, %c0_i32_0 : i32, i32, i32
  }
  func.func @transform_2(%arg0: i32) -> (i32, i32, i32) {
    %c0_i32 = arith.constant 0 : i32
    %c0_i32_0 = arith.constant 0 : i32
    %c0_i32_1 = arith.constant 0 : i32
    return %arg0, %c0_i32, %c0_i32_0 : i32, i32, i32
  }
  func.func @transform_3(%arg0: i32) -> (i32, i32, i32) {
    %c0_i32 = arith.constant 0 : i32
    %c0_i32_0 = arith.constant 0 : i32
    %c0_i32_1 = arith.constant 0 : i32
    return %arg0, %c0_i32, %c0_i32_0 : i32, i32, i32
  }
  func.func @transform_4(%arg0: i32) -> (i32, i32, i32) {
    %c0_i32 = arith.constant 0 : i32
    %c0_i32_0 = arith.constant 0 : i32
    %c0_i32_1 = arith.constant 0 : i32
    return %arg0, %c0_i32, %c0_i32_0 : i32, i32, i32
  }
  func.func @transform_5(%arg0: i32) -> (i32, i32) {
    %c0_i32 = arith.constant 0 : i32
    %c0_i32_0 = arith.constant 0 : i32
    %c0_i32_1 = arith.constant 0 : i32
    return %c0_i32, %c0_i32_0 : i32, i32
  }
  func.func @transform_6(%arg0: i32) -> (i32, i32) {
    %c0_i32 = arith.constant 0 : i32
    %c0_i32_0 = arith.constant 0 : i32
    %c0_i32_1 = arith.constant 0 : i32
    return %c0_i32, %c0_i32_0 : i32, i32
  }
  func.func @transform_7(%arg0: i32) -> (i32, i32) {
    %c0_i32 = arith.constant 0 : i32
    %c0_i32_0 = arith.constant 0 : i32
    %c0_i32_1 = arith.constant 0 : i32
    return %c0_i32, %c0_i32_0 : i32, i32
  }
  func.func @transform_8(%arg0: i32) -> (i32, i32) {
    %c0_i32 = arith.constant 0 : i32
    %c0_i32_0 = arith.constant 0 : i32
    %c0_i32_1 = arith.constant 0 : i32
    return %c0_i32, %c0_i32_0 : i32, i32
  }
  func.func @transform_9(%arg0: i32) -> (i32, i32) {
    %c0_i32 = arith.constant 0 : i32
    %c0_i32_0 = arith.constant 0 : i32
    %c0_i32_1 = arith.constant 0 : i32
    return %c0_i32, %c0_i32_0 : i32, i32
  }
  func.func @transform_10(%arg0: i32) -> (i32, i32) {
    %c0_i32 = arith.constant 0 : i32
    %c0_i32_0 = arith.constant 0 : i32
    %c0_i32_1 = arith.constant 0 : i32
    return %c0_i32, %c0_i32_0 : i32, i32
  }
  func.func @transform_11(%arg0: i32) -> (i32, i32) {
    %c0_i32 = arith.constant 0 : i32
    %c0_i32_0 = arith.constant 0 : i32
    %c0_i32_1 = arith.constant 0 : i32
    return %c0_i32, %c0_i32_0 : i32, i32
  }
  func.func @transform_12(%arg0: i32) -> (i32, i32) {
    %c0_i32 = arith.constant 0 : i32
    %c0_i32_0 = arith.constant 0 : i32
    %c0_i32_1 = arith.constant 0 : i32
    return %c0_i32, %c0_i32_0 : i32, i32
  }
  func.func @transform_13(%arg0: i32) -> (i32, i32) {
    %c0_i32 = arith.constant 0 : i32
    %c0_i32_0 = arith.constant 0 : i32
    %c0_i32_1 = arith.constant 0 : i32
    return %c0_i32, %c0_i32_0 : i32, i32
  }
  func.func @transform_14(%arg0: i32) -> (i32, i32) {
    %c0_i32 = arith.constant 0 : i32
    %c0_i32_0 = arith.constant 0 : i32
    %c0_i32_1 = arith.constant 0 : i32
    return %c0_i32, %c0_i32_0 : i32, i32
  }
  func.func @transform_15(%arg0: i32) -> (i32, i32) {
    %c0_i32 = arith.constant 0 : i32
    %c0_i32_0 = arith.constant 0 : i32
    %c0_i32_1 = arith.constant 0 : i32
    return %c0_i32, %c0_i32_0 : i32, i32
  }
  func.func @transform_16(%arg0: i32) -> (i32, i32) {
    %c0_i32 = arith.constant 0 : i32
    %c0_i32_0 = arith.constant 0 : i32
    %c0_i32_1 = arith.constant 0 : i32
    return %c0_i32, %c0_i32_0 : i32, i32
  }
  func.func @transform_17(%arg0: i32) -> (i32, i32) {
    %c0_i32 = arith.constant 0 : i32
    %c0_i32_0 = arith.constant 0 : i32
    %c0_i32_1 = arith.constant 0 : i32
    return %c0_i32, %c0_i32_0 : i32, i32
  }
  func.func @transform_18(%arg0: i32) -> (i32, i32) {
    %c0_i32 = arith.constant 0 : i32
    %c0_i32_0 = arith.constant 0 : i32
    %c0_i32_1 = arith.constant 0 : i32
    return %c0_i32, %c0_i32_0 : i32, i32
  }
  func.func @transform_19(%arg0: i32) -> (i32, i32) {
    %c0_i32 = arith.constant 0 : i32
    %c0_i32_0 = arith.constant 0 : i32
    %c0_i32_1 = arith.constant 0 : i32
    return %c0_i32, %c0_i32_0 : i32, i32
  }
  func.func @transform_20(%arg0: i32) -> (i32, i32) {
    %c0_i32 = arith.constant 0 : i32
    %c0_i32_0 = arith.constant 0 : i32
    %c0_i32_1 = arith.constant 0 : i32
    return %c0_i32, %c0_i32_0 : i32, i32
  }
  func.func @transform_21(%arg0: i32) -> (i32, i32) {
    %c0_i32 = arith.constant 0 : i32
    %c0_i32_0 = arith.constant 0 : i32
    %c0_i32_1 = arith.constant 0 : i32
    return %c0_i32, %c0_i32_0 : i32, i32
  }
  func.func @transform_22(%arg0: i32) -> (i32, i32) {
    %c0_i32 = arith.constant 0 : i32
    %c0_i32_0 = arith.constant 0 : i32
    %c0_i32_1 = arith.constant 0 : i32
    return %c0_i32, %c0_i32_0 : i32, i32
  }
  func.func @transform_23(%arg0: i32) -> (i32, i32) {
    %c0_i32 = arith.constant 0 : i32
    %c0_i32_0 = arith.constant 0 : i32
    %c0_i32_1 = arith.constant 0 : i32
    return %c0_i32, %c0_i32_0 : i32, i32
  }
  func.func @transform_24(%arg0: i32) -> (i32, i32) {
    %c0_i32 = arith.constant 0 : i32
    %c0_i32_0 = arith.constant 0 : i32
    %c0_i32_1 = arith.constant 0 : i32
    return %c0_i32, %c0_i32_0 : i32, i32
  }
  func.func @transform_25(%arg0: i32) -> (i32, i32) {
    %c0_i32 = arith.constant 0 : i32
    %c0_i32_0 = arith.constant 0 : i32
    %c0_i32_1 = arith.constant 0 : i32
    return %c0_i32, %c0_i32_0 : i32, i32
  }
  func.func @transform_26(%arg0: i32) -> (i32, i32, i32) {
    %c0_i32 = arith.constant 0 : i32
    %c0_i32_0 = arith.constant 0 : i32
    %c0_i32_1 = arith.constant 0 : i32
    return %arg0, %c0_i32, %c0_i32_0 : i32, i32, i32
  }
}

</mosaic_0001>

<bundles_post_ra>
// kernel: forward.1
= control target key start
LH: loop header
LB: loop body
LE: loop exit
PB: predicated region body
PF: predicated region fallthrough
CT: control target
= control target key end

     0   :  { %s4794_s27 = smov 0   ;;  %s5748_s0 = inlined_call_operand.vmem [shape: f32[2,24,32], index: 0, kind: input, shape index: {}]   ;;  %s5749_s1 = inlined_call_operand.vmem [shape: f32[2,64,16], index: 1, kind: input, shape index: {}]   ;;  %s5750_s2 = inlined_call_operand.vmem [shape: s32[2,128,1], index: 2, kind: input, shape index: {}]   ;;  %s5751_s3 = inlined_call_operand.vmem [shape: s32[2,1,64], index: 3, kind: input, shape index: {}]   ;;  %s5752_s4 = inlined_call_operand.vmem [shape: f32[2,1,64], index: 4, kind: input, shape index: {}]   ;;  %s5753_s5 = inlined_call_operand.vmem [shape: f32[1,16], index: 5, kind: input, shape index: {}]   ;;  %s5754_s6 = inlined_call_operand.vmem [shape: f32[32,64], index: 6, kind: input, shape index: {}]   ;;  %s5755_s7 = inlined_call_operand.vmem [shape: f32[1,64], index: 7, kind: input, shape index: {}]   ;;  %s5756_s8 = inlined_call_operand.vmem [shape: f32[64,32], index: 8, kind: input, shape index: {}]   ;;  %s5757_s9 = inlined_call_operand.vmem [shape: f32[1,32], index: 9, kind: input, shape index: {}]   ;;  %s5758_s10 = inlined_call_operand.vmem [shape: f32[16,64], index: 10, kind: input, shape index: {}]   ;;  %s5759_s11 = inlined_call_operand.vmem [shape: f32[1,64], index: 11, kind: input, shape index: {}]   ;;  %s5760_s12 = inlined_call_operand.vmem [shape: f32[64,32], index: 12, kind: input, shape index: {}]   ;;  %s5761_s13 = inlined_call_operand.vmem [shape: f32[1,32], index: 13, kind: input, shape index: {}]   ;;  %s5762_s14 = inlined_call_operand.vmem [shape: f32[96,64], index: 14, kind: input, shape index: {}]   ;;  %s5763_s15 = inlined_call_operand.vmem [shape: f32[1,64], index: 15, kind: input, shape index: {}]   ;;  %s5764_s16 = inlined_call_operand.vmem [shape: f32[96,64], index: 16, kind: input, shape index: {}]   ;;  %s5765_s17 = inlined_call_operand.vmem [shape: f32[64,32], index: 17, kind: input, shape index: {}]   ;;  %s5766_s18 = inlined_call_operand.vmem [shape: f32[1,32], index: 18, kind: input, shape index: {}]   ;;  %s5767_s19 = inlined_call_operand.vmem [shape: f32[64,32], index: 19, kind: input, shape index: {}]   ;;  %s5768_s20 = inlined_call_operand.vmem [shape: f32[1,32], index: 20, kind: input, shape index: {}]   ;;  %s5769_s21 = inlined_call_operand.vmem [shape: f32[32,32], index: 21, kind: input, shape index: {}]   ;;  %s5770_s22 = inlined_call_operand.vmem [shape: f32[32,64], index: 22, kind: input, shape index: {}]   ;;  %s5771_s23 = inlined_call_operand.vmem [shape: f32[1,64], index: 23, kind: input, shape index: {}]   ;;  %s5772_s24 = inlined_call_operand.vmem [shape: f32[64,128], index: 24, kind: input, shape index: {}]   ;;  %s5773_s25 = inlined_call_operand.vmem [shape: f32[1,128], index: 25, kind: input, shape index: {}]   ;;  %s5774_s26 = inlined_call_operand.vmem [shape: f32[2,24,128], index: 26, kind: output, shape index: {}]  }
   0x1   :  { %5782 = sst [smem:[#allocation3_spill]] %s5748_s0 }
   0x2   :  { %5783 = sst [smem:[#allocation4_spill]] %s5749_s1 }
   0x3   :  { %5784 = sst [smem:[#allocation5_spill]] %s5750_s2 }
   0x4   :  { %5785 = sst [smem:[#allocation6_spill]] %s5751_s3 }
   0x5   :  { %5786 = sst [smem:[#allocation7_spill]] %s5752_s4 }
   0x6   :  { %5787 = sst [smem:[#allocation8_spill]] %s5753_s5 }
   0x7   :  { %5788 = sst [smem:[#allocation9_spill]] %s5754_s6 }
   0x8   :  { %5789 = sst [smem:[#allocation10_spill]] %s5755_s7 }
   0x9   :  { %5790 = sst [smem:[#allocation11_spill]] %s5756_s8 }
   0xa   :  { %5791 = sst [smem:[#allocation12_spill]] %s5757_s9 }
   0xb   :  { %5792 = sst [smem:[#allocation13_spill]] %s5758_s10 }
   0xc LB: > { %5793 = sst [smem:[#allocation2_spill]] %s4651_s27  ;;  %s3525_s3 = sadd.s32 4294967295, %s4651_s27   ;;  %s4651_s27 = sphi %s4794_s27, %s36_s27  }
   0xd   : > { %p3529_p0 = scmp.ge.s32.totalorder %s4651_s27, 1  ;;  %p748_p1 = scmp.lt.s32.totalorder %s4651_s27, 3 }
   0xf   : > { %p749_p2 = pnand %p3529_p0, %p748_p1 }
  0x10   : > { %s5794_s8 = sld [smem:[#allocation9_spill]] (!%p749_p2)  ;;  %v4653_v3 = vmov (!%p749_p2), 0.0|0.0   ;;  %vm4654_vm0 = vmmov (!%p749_p2), 0   ;;  %v4655_v6 = vmov (!%p749_p2), 0.0   ;;  %p834_p3 = scmp.lt.s32.totalorder (!%p749_p2), %s3525_s3, 1  ;;  %vm897_vm1 = vcmask (!%p749_p2), 261120  }
  0x11   : > { %752 = sbr.rel (%p749_p2) target bundleno = 3632 (0xe30), region = 124  ;;  %4398 = vmatprep.subr.bf16.mxu0 (!%p749_p2), %v4653_v3  ;;  %3937 = vmatprep.mubr.msk.f32.mxu0 (!%p749_p2), %vm4654_vm0, %v4655_v6  ;;  %s5795_s6 = sld [smem:[#allocation11_spill]] (!%p749_p2)  ;;  %vm1107_vm2 = vcmask (!%p749_p2), 130048   ;;  %v4656_v35 = vmov (!%p749_p2), 0   ;;  %vm1005_vm3 = vcmask (!%p749_p2), 523264   ;;  %vm1539_vm5 = vcmask (!%p749_p2), 195584  }
  0x12   : > { %4404 = vmatprep.subr.bf16.mxu1 (!%p749_p2), %v4653_v3  ;;  %3962 = vmatprep.mubr.msk.f32.mxu1 (!%p749_p2), %vm4654_vm0, %v4655_v6  ;;  %s5796_s28 = sld [smem:[#allocation3_spill]] (!%p749_p2)  ;;  %s5797_s7 = sld [smem:[#allocation13_spill]] (!%p749_p2) }
  0x13   : > { %s5798_s0 = sld [smem:[#allocation4_spill]] (!%p749_p2)  ;;  %4643 = vset.pattern.permute.xlu0 (!%p749_p2), %v4656_v35  ;;  %4644 = vset.pattern.permute.xlu1 (!%p749_p2), %v4656_v35  ;;  %s4657_s2 = smov (!%p749_p2), 64  }
  0x14   : > { %s5803_s1 = sld [smem:[#allocation6_spill]] (!%p749_p2) }
  0x16   : > { %v886_v0 = vld [vmem:[%s5794_s8] sm:$0xff] (!%p749_p2)  ;;  %v887_v1 = vld [vmem:[%s5794_s8 + $0x8] sm:$0xff] (!%p749_p2)  ;;  %v888_v2 = vld [vmem:[%s5794_s8 + $0x10] sm:$0xff] (!%p749_p2) }
  0x17   : > { %v4399_v4 = vpack.c.bf16 (!%p749_p2), %v887_v1, %v886_v0  ;;  %v889_v5 = vld [vmem:[%s5794_s8 + $0x18] sm:$0xff] (!%p749_p2)  ;;  %v990_v7 = vld [vmem:[%s5795_s6] sm:$0xff] (!%p749_p2)  ;;  %v991_v8 = vld [vmem:[%s5795_s6 + $0x8] sm:$0xff] (!%p749_p2) }
  0x18   : > { %v4405_v9 = vpack.c.bf16 %v991_v8, %v990_v7  ;;  %v992_v10 = vld [vmem:[%s5795_s6 + $0x10] sm:$0xff]  ;;  %v993_v11 = vld [vmem:[%s5795_s6 + $0x18] sm:$0xff]  ;;  %v4402_v12 = vpack.c.bf16 %v889_v5, %v888_v2  ;;  %s5808_s3 = smov (!%p834_p3, %s3525_s3), 1  ;;  %v994_v14 = vld [vmem:[%s5795_s6 + $0x20] sm:$0xff] }
  0x19   : > { %4400 = vmatpush3.bf16.msra.mxu0 %v4399_v4  ;;  %v4408_v13 = vpack.c.bf16 %v993_v11, %v992_v10  ;;  %s5778_s9 = smul.u32 24, %s5808_s3  ;;  %v995_v15 = vld [vmem:[%s5795_s6 + $0x28] sm:$0xff]  ;;  %v996_v20 = vld [vmem:[%s5795_s6 + $0x30] sm:$0xff]  ;;  %v997_v21 = vld [vmem:[%s5795_s6 + $0x38] sm:$0xff]  ;;  %s3685_s5 = sshll.u32 %s5808_s3, 7  ;;  %v1397_v11 = vlaneseq }
  0x1a   : > { %4401 = vmatprep.subr.bf16.mxu0 %v4653_v3  ;;  %4406 = vmatpush3.bf16.msra.mxu1 %v4405_v9  ;;  %v4411_v17 = vpack.c.bf16 %v995_v15, %v994_v14  ;;  %v4414_v22 = vpack.c.bf16 %v997_v21, %v996_v20  ;;  %v1098_v23 = vld [vmem:[%s5797_s7] sm:$0xff]  ;;  %v1099_v24 = vld [vmem:[%s5797_s7 + $0x8] sm:$0xff]  ;;  %s5799_s6 = sld [smem:[#allocation5_spill]] }
  0x1b   : > { %4407 = vmatprep.subr.bf16.mxu1 %v4653_v3  ;;  %s838_s4 = scalar_lea.vmem %s5796_s28, %s5778_s9  ;;  %v4416_v25 = vpack.c.bf16 %v1099_v24, %v1098_v23  ;;  %s5800_s28 = sld [smem:[#allocation8_spill]]  ;;  %v4933_v15 = vand.u32 127, %v1397_v11  ;;  %v1249_v20 = vld [vmem:[%s5760_s12 + $0x20] sm:$0xff]  ;;  %v1250_v21 = vld [vmem:[%s5760_s12 + $0x28] sm:$0xff] }
  0x1c   : > { %v883_v16 = vld [vmem:[%s838_s4] sm:$0xff]  ;;  %v884_v18 = vld [vmem:[%s838_s4 + $0x8] sm:$0xff]  ;;  %v885_v19 = vld [vmem:[%s838_s4 + $0x10] sm:$0xff]  ;;  %s3684_s4 = sshll.u32 %s5808_s3, 6  ;;  %s5802_s9 = sld [smem:[#allocation12_spill]] }
  0x1d   : > { %4403 = vmatpush3.bf16.msra.mxu0 %v4402_v12  ;;  %s4874_s27 = scalar_lea.vmem %s5798_s0, %s3684_s4  ;;  %v1245_v12 = vld [vmem:[%s5760_s12] sm:$0xff] }
  0x1e   : > { %4409 = vmatpush3.bf16.msra.mxu1 %v4408_v13  ;;  %4417 = vmatprep.subr.bf16.mxu0 %v4416_v25  ;;  %v860_v26 = vld [vmem:[%s4874_s27] sm:$0xff]  ;;  %v861_v29 = vld [vmem:[%s4874_s27 + $0x8] sm:$0xff]  ;;  %v862_v30 = vld [vmem:[%s4874_s27 + $0x10] sm:$0xff] }
  0x1f   : > { %4410 = vmatprep.subr.bf16.mxu1 %v4653_v3  ;;  %v863_v31 = vld [vmem:[%s4874_s27 + $0x18] sm:$0xff]  ;;  %v864_v34 = vld [vmem:[%s4874_s27 + $0x20] sm:$0xff]  ;;  %v865_v40 = vld [vmem:[%s4874_s27 + $0x28] sm:$0xff] }
  0x20   : > { %3938 = vmatmul.mubr.msk.f32.vlgmr.msra.gmra.mrb[0].mxu0 %vm897_vm1, %v883_v16  ;;  %s4879_s10 = scalar_lea.vmem %s5799_s6, %s3685_s5  ;;  %v866_v42 = vld [vmem:[%s4874_s27 + $0x30] sm:$0xff]  ;;  %v867_v46 = vld [vmem:[%s4874_s27 + $0x38] sm:$0xff]  ;;  %s5801_s6 = sld [smem:[#allocation10_spill]]  ;;  %v1246_v13 = vld [vmem:[%s5760_s12 + $0x8] sm:$0xff] }
  0x21   : > { %3940 = vmatprep.mubr.msk.f32.mxu0 %vm4654_vm0, %v4655_v6  ;;  %v3536_v27 = vld [vmem:[%s5800_s28] ss:$0 sm:$0xff]  ;;  %4419 = vmatpush3.bf16.msra.mxu0 %v4416_v25  ;;  %v1401_v37 = vld [vmem:[%s4879_s10 + $0x10] sm:$0xff]  ;;  %v1400_v41 = vld [vmem:[%s4879_s10 + $0x8] sm:$0xff]  ;;  %v4420_v14 = vpack.c.bf16 %v1246_v13, %v1245_v12  ;;  %s4658_s27 = smov 32   ;;  %s851_s28 = scalar_lea.vmem %s5803_s1, %s5808_s3 }
  0x22   : > { %4412 = vmatpush3.bf16.msra.mxu1 %v4411_v17  ;;  %v875_v28 = vmul.f32 %v3536_v27, %v860_v26  ;;  %v876_v32 = vmul.f32 %v3536_v27, %v861_v29  ;;  %v877_v33 = vmul.f32 %v3536_v27, %v862_v30  ;;  %v1399_v36 = vld [vmem:[%s4879_s10] sm:$0xff]  ;;  %v878_v38 = vmul.f32 %v3536_v27, %v863_v31  ;;  %v1402_v43 = vld [vmem:[%s4879_s10 + $0x18] sm:$0xff]  ;;  %v1404_v48 = vld [vmem:[%s4879_s10 + $0x28] sm:$0xff]  ;;  %s5804_s5 = sld [smem:[#allocation7_spill]] }
  0x23   : > { %4413 = vmatprep.subr.bf16.mxu1 %v4653_v3  ;;  %1416 = vperm.xlu0 %4643, %v1399_v36   ;;  %v879_v39 = vmul.f32 %v3536_v27, %v864_v34  ;;  %v880_v44 = vmul.f32 %v3536_v27, %v865_v40  ;;  %v881_v45 = vmul.f32 %v3536_v27, %v866_v42  ;;  %v1403_v47 = vld [vmem:[%s4879_s10 + $0x20] sm:$0xff]  ;;  %v1405_v50 = vld [vmem:[%s4879_s10 + $0x30] sm:$0xff]  ;;  %v1406_v51 = vld [vmem:[%s4879_s10 + $0x38] sm:$0xff] }
  0x24   : > { %3941 = vmatmul.mubr.msk.f32.gmra.mrb[2].mxu0 %vm897_vm1, %v884_v18  ;;  %1422 = vperm.xlu1 %4644, %v1401_v37   ;;  %v882_v49 = vmul.f32 %v3536_v27, %v867_v46  ;;  %v1407_v52 = vld [vmem:[%s4879_s10 + $0x40] sm:$0xff]  ;;  %v1408_v53 = vld [vmem:[%s4879_s10 + $0x48] sm:$0xff]  ;;  %v1409_v54 = vld [vmem:[%s4879_s10 + $0x50] sm:$0xff] }
  0x25   : > { %3943 = vmatprep.mubr.msk.f32.mxu0 %vm4654_vm0, %v4655_v6  ;;  %v1410_v55 = vld [vmem:[%s4879_s10 + $0x58] sm:$0xff]  ;;  %v1411_v56 = vld [vmem:[%s4879_s10 + $0x60] sm:$0xff]  ;;  %v1412_v57 = vld [vmem:[%s4879_s10 + $0x68] sm:$0xff] }
  0x26   : > { %4415 = vmatpush3.bf16.msra.mxu1 %v4414_v22  ;;  %v1413_v58 = vld [vmem:[%s4879_s10 + $0x70] sm:$0xff]  ;;  %v1414_v59 = vld [vmem:[%s4879_s10 + $0x78] sm:$0xff]  ;;  %v3537_v60 = vld [vmem:[%s5801_s6] ss:$0 sm:$0xff]  ;;  %v4428_v22 = vpack.c.bf16 %v1250_v21, %v1249_v20  ;;  %s5805_s6 = smul.u32 24, %s5808_s3 }
  0x27   : > { %1419 = vperm.xlu0 %4643, %v1400_v41   ;;  %4421 = vmatprep.subr.bf16.mxu1 %v4420_v14  ;;  %v1247_v16 = vld [vmem:[%s5760_s12 + $0x10] sm:$0xff]  ;;  %v1248_v17 = vld [vmem:[%s5760_s12 + $0x18] sm:$0xff]  ;;  %v3545_v25 = vld [vmem:[%s5759_s11] ss:$0 sm:$0xff] }
  0x28   : > { %3944 = vmatmul.mubr.msk.f32.gmra.mrb[4].mxu0 %vm897_vm1, %v885_v19  ;;  %1425 = vperm.xlu1 %4644, %v1402_v43   ;;  %v4424_v18 = vpack.c.bf16 %v1248_v17, %v1247_v16  ;;  %v1251_v26 = vld [vmem:[%s5760_s12 + $0x30] sm:$0xff]  ;;  %v1252_v27 = vld [vmem:[%s5760_s12 + $0x38] sm:$0xff]  ;;  %v1972_v12 = vld [vmem:[%s5769_s21 + $0x8] sm:$0xff]  ;;  %s854_s4 = scalar_lea.vmem %s5804_s5, %s5808_s3 }
  0x29   : > { %3975 = vmatprep.mubr.msk.f32.mxu0 %vm1107_vm2, %v875_v28  ;;  %v4432_v31 = vpack.c.bf16 %v1252_v27, %v1251_v26  ;;  %v1973_v17 = vld [vmem:[%s5769_s21 + $0x10] sm:$0xff] }
  0x2b   : > { %1428 = vperm.xlu0 %4643, %v1403_v47  }
  0x2c   : > { %3976 = vmatmul.mubr.msk.f32.vlgmr.msra.gmra.mrb[6].mxu0 %vm1107_vm2, %v876_v32  ;;  %1431 = vperm.xlu1 %4644, %v1404_v48  }
  0x2d   : > { %3978 = vmatprep.mubr.msk.f32.mxu0 %vm1107_vm2, %v877_v33 }
  0x2f   : > { %1434 = vperm.xlu0 %4643, %v1405_v50  }
  0x30   : > { %3979 = vmatmul.mubr.msk.f32.gmra.mrb[8].mxu0 %vm1107_vm2, %v878_v38  ;;  %1437 = vperm.xlu1 %4644, %v1406_v51  }
  0x31   : > { %3981 = vmatprep.mubr.msk.f32.mxu0 %vm1107_vm2, %v879_v39 }
  0x33   : > { %1440 = vperm.xlu0 %4643, %v1407_v52  }
  0x34   : > { %3982 = vmatmul.mubr.msk.f32.gmra.mrb[10].mxu0 %vm1107_vm2, %v880_v44  ;;  %1443 = vperm.xlu1 %4644, %v1408_v53  }
  0x35   : > { %3984 = vmatprep.mubr.msk.f32.mxu0 %vm1107_vm2, %v881_v45 }
  0x37   : > { %1446 = vperm.xlu0 %4643, %v1409_v54   ;;  %v3541_v54 = vld [vmem:[%s5802_s9] ss:$0 sm:$0xff] }
  0x38   : > { %3985 = vmatmul.mubr.msk.f32.gmra.mrb[12].mxu0 %vm1107_vm2, %v882_v49  ;;  %1449 = vperm.xlu1 %4644, %v1410_v55  }
  0x3b   : > { %1452 = vperm.xlu0 %4643, %v1411_v56  }
  0x3c   : > { %1455 = vperm.xlu1 %4644, %v1412_v57  }
  0x3f   : > { %1458 = vperm.xlu0 %4643, %v1413_v58  }
  0x40   : > { %1461 = vperm.xlu1 %4644, %v1414_v59  }
  0xa2   : > { %v1417_v19 = vpop.permute.xlu0 %1416 }
  0xa3   : > { %vm1463_vm4 = vcmp.eq.s32.totalorder %v4933_v15, %v1417_v19  ;;  %v1423_v52 = vpop.permute.xlu1 %1422 }
  0xa4   : > { %v4949_v23 = vsel %vm1463_vm4, 1.0, %v4655_v6  ;;  %vm1465_vm6 = vcmp.eq.s32.totalorder %v4933_v15, %v1423_v52 }
  0xa5   : > { %4021 = vmatprep.mubr.msk.f32.mxu0 %vm1539_vm5, %v4949_v23  ;;  %v4991_v16 = vsel %vm1465_vm6, 1.0, %v4655_v6 }
  0xa6   : > { %v1420_v53 = vpop.permute.xlu0 %1419 }
  0xa7   : > { %v1426_v57 = vpop.permute.xlu1 %1425  ;;  %vm1464_vm7 = vcmp.eq.s32.totalorder %v4933_v15, %v1420_v53 }
  0xa8   : > { %v5000_v19 = vsel %vm1464_vm7, 1.0, %v4655_v6  ;;  %vm1466_vm8 = vcmp.eq.s32.totalorder %v4933_v15, %v1426_v57 }
  0xf3   : > { %v973_v61 = vpop.f32.mrb[0].mxu0 }
  0xf4   : > { %v974_v62 = vadd.f32 %v3537_v60, %v973_v61  ;;  %v3939_v63 = vpop.f32.mrb[1].mxu0 }
  0xf6   : > { %v987_v0 = vmax.f32 %v974_v62, 0.0 }
  0xf7   : > { %v978_v1 = vpop.f32.mrb[2].mxu0 }
  0xf8   : > { %v979_v2 = vadd.f32 %v3537_v60, %v978_v1  ;;  %v3942_v4 = vpop.f32.mrb[3].mxu0  ;;  %3963 = vmatmul.mubr.msk.f32.vlgmr.msra.gmra.mrb[0].mxu1 %vm1005_vm3, %v987_v0  ;;  %v1432_v1 = vpop.permute.xlu1 %1431 }
  0xf9   : > { %3965 = vmatprep.mubr.msk.f32.mxu1 %vm4654_vm0, %v4655_v6  ;;  %4423 = vmatpush3.bf16.msra.mxu1 %v4420_v14  ;;  %vm1468_vm10 = vcmp.eq.s32.totalorder %v4933_v15, %v1432_v1  ;;  %v1814_v1 = vld [vmem:[%s5764_s16] sm:$0xff] }
  0xfa   : > { %v988_v5 = vmax.f32 %v979_v2, 0.0  ;;  %4425 = vmatprep.subr.bf16.mxu1 %v4424_v18  ;;  %v5024_v27 = vsel %vm1468_vm10, 1.0, %v4655_v6 }
  0xfb   : > { %v983_v7 = vpop.f32.mrb[4].mxu0 }
  0xfc   : > { %v984_v8 = vadd.f32 %v3537_v60, %v983_v7  ;;  %3966 = vmatmul.mubr.msk.f32.gmra.mrb[2].mxu1 %vm1005_vm3, %v988_v5  ;;  %v3945_v9 = vpop.f32.mrb[5].mxu0  ;;  %v1429_v60 = vpop.permute.xlu0 %1428 }
  0xfd   : > { %3968 = vmatprep.mubr.msk.f32.mxu1 %vm4654_vm0, %v4655_v6  ;;  %4427 = vmatpush3.bf16.msra.mxu1 %v4424_v18  ;;  %v1438_v13 = vpop.permute.xlu1 %1437  ;;  %v1974_v18 = vld [vmem:[%s5769_s21 + $0x18] sm:$0xff]  ;;  %vm1467_vm9 = vcmp.eq.s32.totalorder %v4933_v15, %v1429_v60 }
  0xfe   : > { %v989_v10 = vmax.f32 %v984_v8, 0.0  ;;  %4429 = vmatprep.subr.bf16.mxu1 %v4428_v22  ;;  %v4468_v21 = vpack.c.bf16 %v1974_v18, %v1973_v17  ;;  %vm1470_vm12 = vcmp.eq.s32.totalorder %v4933_v15, %v1438_v13  ;;  %v1821_v17 = vld [vmem:[%s5764_s16 + $0x38] sm:$0xff] }
  0xff   : > { %v3977_v24 = vpop.f32.mrb[6].mxu0 }
 0x100   : > { %3969 = vmatmul.mubr.msk.f32.gmra.mrb[4].mxu1 %vm1005_vm3, %v989_v10  ;;  %v1204_v28 = vadd.f32 %v3977_v24, %v3545_v25  ;;  %v1198_v29 = vpop.f32.mrb[7].mxu0  ;;  %v1435_v8 = vpop.permute.xlu0 %1434  ;;  %v1971_v10 = vld [vmem:[%s5769_s21] sm:$0xff] }
 0x101   : > { %4431 = vmatpush3.bf16.msra.mxu1 %v4428_v22  ;;  %v1199_v30 = vadd.f32 %v3545_v25, %v1198_v29  ;;  %v4465_v14 = vpack.c.bf16 %v1972_v12, %v1971_v10  ;;  %v5012_v22 = vsel %vm1466_vm8, 1.0, %v4655_v6  ;;  %v1444_v24 = vpop.permute.xlu1 %1443  ;;  %vm1469_vm11 = vcmp.eq.s32.totalorder %v4933_v15, %v1435_v8  ;;  %v1818_v10 = vld [vmem:[%s5764_s16 + $0x20] sm:$0xff]  ;;  %v1819_v12 = vld [vmem:[%s5764_s16 + $0x28] sm:$0xff] }
 0x102   : > { %v1238_v32 = vmax.f32 %v1204_v28, 0.0  ;;  %4433 = vmatprep.subr.bf16.mxu1 %v4432_v31  ;;  %v5027_v28 = vsel %vm1469_vm11, 1.0, %v4655_v6  ;;  %vm1472_vm14 = vcmp.eq.s32.totalorder %v4933_v15, %v1444_v24  ;;  %v4448_v13 = vpack.c.bf16 %v1819_v12, %v1818_v10 }
 0x103   : > { %v1237_v33 = vmax.f32 %v1199_v30, 0.0  ;;  %v3980_v34 = vpop.f32.mrb[8].mxu0  ;;  %v5036_v30 = vsel %vm1470_vm12, 1.0, %v4655_v6 }
 0x104   : > { %v1214_v35 = vadd.f32 %v3980_v34, %v3545_v25  ;;  %v1208_v36 = vpop.f32.mrb[9].mxu0  ;;  %v1441_v20 = vpop.permute.xlu0 %1440 }
 0x105   : > { %4435 = vmatpush3.bf16.msra.mxu1 %v4432_v31  ;;  %v1209_v37 = vadd.f32 %v3545_v25, %v1208_v36  ;;  %4003 = vmatprep.mubr.msk.f32.mxu1 %vm1005_vm3, %v1237_v33  ;;  %vm1471_vm13 = vcmp.eq.s32.totalorder %v4933_v15, %v1441_v20  ;;  %v1450_v29 = vpop.permute.xlu1 %1449  ;;  %v5048_v33 = vsel %vm1472_vm14, 1.0, %v4655_v6  ;;  %v1822_v20 = vld [vmem:[%s5764_s16 + $0x40] sm:$0xff] }
 0x106   : > { %v1240_v38 = vmax.f32 %v1214_v35, 0.0  ;;  %v5039_v31 = vsel %vm1471_vm13, 1.0, %v4655_v6  ;;  %vm1474_vm2 = vcmp.eq.s32.totalorder %v4933_v15, %v1450_v29  ;;  %v1825_v29 = vld [vmem:[%s5764_s16 + $0x58] sm:$0xff] }
 0x107   : > { %v1239_v39 = vmax.f32 %v1209_v37, 0.0  ;;  %v3983_v40 = vpop.f32.mrb[10].mxu0  ;;  %v5060_v37 = vsel %vm1474_vm2, 1.0, %v4655_v6 }
 0x108   : > { %4004 = vmatmul.mubr.msk.f32.vlgmr.msra.gmra.mrb[6].mxu1 %vm1005_vm3, %v1238_v32  ;;  %v1224_v41 = vadd.f32 %v3983_v40, %v3545_v25  ;;  %v1218_v42 = vpop.f32.mrb[11].mxu0  ;;  %v1447_v26 = vpop.permute.xlu0 %1446 }
 0x109   : > { %4006 = vmatprep.mubr.msk.f32.mxu1 %vm1005_vm3, %v1239_v39  ;;  %v1219_v43 = vadd.f32 %v3545_v25, %v1218_v42  ;;  %vm1473_vm15 = vcmp.eq.s32.totalorder %v4933_v15, %v1447_v26  ;;  %v1456_v34 = vpop.permute.xlu1 %1455  ;;  %v1824_v26 = vld [vmem:[%s5764_s16 + $0x50] sm:$0xff] }
 0x10a   : > { %v1242_v44 = vmax.f32 %v1224_v41, 0.0  ;;  %v5051_v35 = vsel %vm1473_vm15, 1.0, %v4655_v6  ;;  %vm1476_vm6 = vcmp.eq.s32.totalorder %v4933_v15, %v1456_v34 }
 0x10b   : > { %v1241_v45 = vmax.f32 %v1219_v43, 0.0  ;;  %v3986_v46 = vpop.f32.mrb[12].mxu0  ;;  %v5072_v40 = vsel %vm1476_vm6, 1.0, %v4655_v6 }
 0x10c   : > { %4007 = vmatmul.mubr.msk.f32.gmra.mrb[8].mxu1 %vm1005_vm3, %v1240_v38  ;;  %v1234_v47 = vadd.f32 %v3986_v46, %v3545_v25  ;;  %v1228_v48 = vpop.f32.mrb[13].mxu0  ;;  %v1453_v32 = vpop.permute.xlu0 %1452 }
 0x10d   : > { %4009 = vmatprep.mubr.msk.f32.mxu1 %vm1005_vm3, %v1241_v45  ;;  %v1229_v49 = vadd.f32 %v3545_v25, %v1228_v48  ;;  %v5015_v25 = vsel %vm1467_vm9, 1.0, %v4655_v6  ;;  %vm1475_vm4 = vcmp.eq.s32.totalorder %v4933_v15, %v1453_v32  ;;  %v1462_v39 = vpop.permute.xlu1 %1461  ;;  %v4460_v32 = vpack.c.bf16 %v1825_v29, %v1824_v26 }
 0x10e   : > { %v1244_v50 = vmax.f32 %v1234_v47, 0.0  ;;  %v5063_v38 = vsel %vm1475_vm4, 1.0, %v4655_v6  ;;  %vm1478_vm8 = vcmp.eq.s32.totalorder %v4933_v15, %v1462_v39  ;;  %vm1826_vm9 = vcmask 785408  }
 0x10f   : > { %v1243_v51 = vmax.f32 %v1229_v49, 0.0  ;;  %v5083_v42 = vsel %vm1478_vm8, 1.0, %v4655_v6 }
 0x110   : > { %4010 = vmatmul.mubr.msk.f32.gmra.mrb[10].mxu1 %vm1005_vm3, %v1242_v44  ;;  %v1459_v36 = vpop.permute.xlu0 %1458 }
 0x111   : > { %4012 = vmatprep.mubr.msk.f32.mxu1 %vm1005_vm3, %v1243_v51  ;;  %vm1477_vm7 = vcmp.eq.s32.totalorder %v4933_v15, %v1459_v36  ;;  %v3554_v15 = vld [vmem:[%s5761_s13] ss:$0 sm:$0xff] }
 0x112   : > { %v5075_v41 = vsel %vm1477_vm7, 1.0, %v4655_v6 }
 0x114   : > { %4013 = vmatmul.mubr.msk.f32.gmra.mrb[12].mxu1 %vm1005_vm3, %v1244_v50 }
 0x1cb   : > { %v1081_v55 = vpop.f32.mrb[0].mxu1 }
 0x1cc   : > { %v3964_v56 = vpop.f32.mrb[1].mxu1  ;;  %v1082_v58 = vadd.f32 %v3541_v54, %v1081_v55 }
 0x1ce   : > { %v4973_v63 = vmax.f32 %v1082_v58, 0.0 }
 0x1cf   : > { %v1086_v59 = vpop.f32.mrb[2].mxu1 }
 0x1d0   : > { %v1087_v61 = vadd.f32 %v3541_v54, %v1086_v59  ;;  %v3967_v62 = vpop.f32.mrb[3].mxu1 }
 0x1d2   : > { %v4975_v0 = vmax.f32 %v1087_v61, 0.0 }
 0x1d3   : > { %v1091_v2 = vpop.f32.mrb[4].mxu1 }
 0x1d4   : > { %v1092_v4 = vadd.f32 %v3541_v54, %v1091_v2  ;;  %v3970_v5 = vpop.f32.mrb[5].mxu1  ;;  %v4436_v7 = vpack.c.bf16 %v4975_v0, %v4973_v63  ;;  %v1815_v2 = vld [vmem:[%s5764_s16 + $0x8] sm:$0xff] }
 0x1d5   : > { %v4440_v5 = vpack.c.bf16 %v1815_v2, %v1814_v1 }
 0x1d6   : > { %v4979_v9 = vmax.f32 %v1092_v4, 0.0  ;;  %4437 = vmatprep.subr.bf16.mxu0 %v4436_v7  ;;  %v1816_v4 = vld [vmem:[%s5764_s16 + $0x10] sm:$0xff] }
 0x1d7   : > { %4439 = vmatpush3.bf16.msra.mxu0 %v4436_v7  ;;  %v1817_v7 = vld [vmem:[%s5764_s16 + $0x18] sm:$0xff]  ;;  %4441 = vmatprep.subr.bf16.mxu1 %v4440_v5 }
 0x1d8   : > { %4019 = vmatprep.subr.mxu0 %v4979_v9  ;;  %v4444_v8 = vpack.c.bf16 %v1817_v7, %v1816_v4  ;;  %4443 = vmatpush3.bf16.msra.mxu1 %v4440_v5 }
 0x1da   : > { %4445 = vmatprep.subr.bf16.mxu1 %v4444_v8 }
 0x1db   : > { %4020 = vmatpush3.msra.mxu0 %v4979_v9  ;;  %v4005_v43 = vpop.f32.mrb[6].mxu1 }
 0x1dc   : > { %4022 = vmatmul.mubr.msk.f32.vlgmr.msra.gmra.mrb[14].mxu0 %vm1539_vm5, %v5000_v19  ;;  %4464 = vmatprep.subr.bf16.mxu0 %v4653_v3  ;;  %v1356_v44 = vadd.f32 %v4005_v43, %v3554_v15  ;;  %v1350_v45 = vpop.f32.mrb[7].mxu1  ;;  %v2074_v43 = vld [vmem:[%s5762_s14 + $0x8] sm:$0xff] }
 0x1dd   : > { %4024 = vmatprep.mubr.msk.f32.mxu0 %vm1539_vm5, %v4991_v16  ;;  %4466 = vmatpush3.bf16.msra.mxu0 %v4465_v14  ;;  %v1351_v46 = vadd.f32 %v3554_v15, %v1350_v45  ;;  %v1820_v14 = vld [vmem:[%s5764_s16 + $0x30] sm:$0xff] }
 0x1de   : > { %4467 = vmatprep.subr.bf16.mxu0 %v4653_v3  ;;  %v1390_v47 = vmax.f32 %v1356_v44, 0.0  ;;  %4447 = vmatpush3.bf16.msra.mxu1 %v4444_v8  ;;  %v4452_v18 = vpack.c.bf16 %v1821_v17, %v1820_v14 }
 0x1df   : > { %v1389_v48 = vmax.f32 %v1351_v46, 0.0  ;;  %v4008_v49 = vpop.f32.mrb[8].mxu1  ;;  %4449 = vmatprep.subr.bf16.mxu1 %v4448_v13 }
 0x1e0   : > { %4025 = vmatmul.mubr.msk.f32.gmra.mrb[16].mxu0 %vm1539_vm5, %v5012_v22  ;;  %v1366_v50 = vadd.f32 %v4008_v49, %v3554_v15  ;;  %v1360_v51 = vpop.f32.mrb[9].mxu1  ;;  %1775 = vrot.lane.b32.xlu1 %v1390_v47, %s4657_s2 }
 0x1e1   : > { %4027 = vmatprep.mubr.msk.f32.mxu0 %vm1539_vm5, %v5015_v25  ;;  %4469 = vmatpush3.bf16.msra.mxu0 %v4468_v21  ;;  %v1361_v52 = vadd.f32 %v3554_v15, %v1360_v51  ;;  %v1823_v21 = vld [vmem:[%s5764_s16 + $0x48] sm:$0xff] }
 0x1e2   : > { %1773 = vrot.lane.b32.xlu0 %v1389_v48, %s4657_s2  ;;  %v1392_v53 = vmax.f32 %v1366_v50, 0.0  ;;  %4451 = vmatpush3.bf16.msra.mxu1 %v4448_v13  ;;  %v4456_v24 = vpack.c.bf16 %v1823_v21, %v1822_v20 }
 0x1e3   : > { %v1391_v54 = vmax.f32 %v1361_v52, 0.0  ;;  %v4011_v55 = vpop.f32.mrb[10].mxu1  ;;  %4453 = vmatprep.subr.bf16.mxu1 %v4452_v18 }
 0x1e4   : > { %4028 = vmatmul.mubr.msk.f32.gmra.mrb[18].mxu0 %vm1539_vm5, %v5024_v27  ;;  %1779 = vrot.lane.b32.xlu1 %v1392_v53, %s4657_s2  ;;  %v1376_v56 = vadd.f32 %v4011_v55, %v3554_v15  ;;  %v1370_v57 = vpop.f32.mrb[11].mxu1 }
 0x1e5   : > { %4030 = vmatprep.mubr.msk.f32.mxu0 %vm1539_vm5, %v5027_v28  ;;  %v1371_v58 = vadd.f32 %v3554_v15, %v1370_v57 }
 0x1e6   : > { %1777 = vrot.lane.b32.xlu0 %v1391_v54, %s4657_s2  ;;  %4455 = vmatpush3.bf16.msra.mxu1 %v4452_v18  ;;  %v1394_v52 = vmax.f32 %v1376_v56, 0.0 }
 0x1e7   : > { %v4014_v59 = vpop.f32.mrb[12].mxu1  ;;  %4457 = vmatprep.subr.bf16.mxu1 %v4456_v24  ;;  %v1393_v53 = vmax.f32 %v1371_v58, 0.0 }
 0x1e8   : > { %4031 = vmatmul.mubr.msk.f32.gmra.mrb[20].mxu0 %vm1539_vm5, %v5036_v30  ;;  %v5106_v60 = vadd.f32 %v4014_v59, %v3554_v15  ;;  %v1380_v61 = vpop.f32.mrb[13].mxu1 }
 0x1e9   : > { %4033 = vmatprep.mubr.msk.f32.mxu0 %vm1539_vm5, %v5039_v31  ;;  %v5108_v62 = vadd.f32 %v3554_v15, %v1380_v61  ;;  %v2073_v15 = vld [vmem:[%s5762_s14] sm:$0xff] }
 0x1ea   : > { %4459 = vmatpush3.bf16.msra.mxu1 %v4456_v24  ;;  %v5156_v45 = vpack.c.bf16 %v2074_v43, %v2073_v15  ;;  %v1396_v2 = vmax.f32 %v5106_v60, 0.0  ;;  %v2075_v60 = vld [vmem:[%s5762_s14 + $0x10] sm:$0xff]  ;;  %v2077_v43 = vld [vmem:[%s5762_s14 + $0x20] sm:$0xff] }
 0x1eb   : > { %4461 = vmatprep.subr.bf16.mxu1 %v4460_v32  ;;  %v1395_v4 = vmax.f32 %v5108_v62, 0.0  ;;  %v2076_v62 = vld [vmem:[%s5762_s14 + $0x18] sm:$0xff] }
 0x1ec   : > { %4034 = vmatmul.mubr.msk.f32.gmra.mrb[22].mxu0 %vm1539_vm5, %v5048_v33  ;;  %v5196_v29 = vpack.c.bf16 %v2076_v62, %v2075_v60 }
 0x1ed   : > { %4036 = vmatprep.mubr.msk.f32.mxu0 %vm1539_vm5, %v5051_v35 }
 0x1ee   : > { %4463 = vmatpush3.bf16.msra.mxu1 %v4460_v32 }
 0x1ef   : > { %4471 = vmatprep.subr.bf16.mxu1 %v5156_v45 }
 0x1f0   : > { %4037 = vmatmul.mubr.msk.f32.gmra.mrb[24].mxu0 %vm1539_vm5, %v5060_v37 }
 0x1f1   : > { %4039 = vmatprep.mubr.msk.f32.mxu0 %vm1539_vm5, %v5063_v38 }
 0x1f4   : > { %4040 = vmatmul.mubr.msk.f32.gmra.mrb[26].mxu0 %vm1539_vm5, %v5072_v40 }
 0x1f5   : > { %4042 = vmatprep.mubr.msk.f32.mxu0 %vm1539_vm5, %v5075_v41 }
 0x1f8   : > { %4043 = vmatmul.mubr.msk.f32.gmra.mrb[28].mxu0 %vm1539_vm5, %v5083_v42 }
 0x1f9   : > { %4089 = vmatprep.mubr.msk.f32.mxu0 %vm4654_vm0, %v4655_v6 }
 0x1fc   : > { %4090 = vmatmul.mubr.msk.f32.vlgmr.msra.gmra.mrb[30].mxu0 %vm897_vm1, %v4973_v63 }
 0x1fd   : > { %4092 = vmatprep.mubr.msk.f32.mxu0 %vm4654_vm0, %v4655_v6 }
 0x200   : > { %4093 = vmatmul.mubr.msk.f32.gmra.mrb[32].mxu0 %vm897_vm1, %v4975_v0 }
 0x201   : > { %4095 = vmatprep.mubr.msk.f32.mxu0 %vm4654_vm0, %v4655_v6 }
 0x204   : > { %4096 = vmatmul.mubr.msk.f32.gmra.mrb[34].mxu0 %vm897_vm1, %v4979_v9 }
 0x252   : > { %v1776_v12 = vpop.permute.xlu1 %1775 }
 0x254   : > { %v1774_v13 = vpop.permute.xlu0 %1773 }
 0x256   : > { %v1780_v14 = vpop.permute.xlu1 %1779 }
 0x258   : > { %v1778_v17 = vpop.permute.xlu0 %1777 }
 0x2af   : > { %v4023_v34 = vpop.f32.mrb[14].mxu0 }
 0x2b0   : > { %v1654_v36 = vpop.f32.mrb[15].mxu0 }
 0x2b3   : > { %v5146_v39 = vpop.f32.mrb[16].mxu0 }
 0x2b4   : > { %v5154_v44 = vpop.f32.mrb[17].mxu0 }
 0x2b7   : > { %v5159_v46 = vpop.f32.mrb[18].mxu0 }
 0x2b8   : > { %v5161_v47 = vpop.f32.mrb[19].mxu0 }
 0x2bb   : > { %v5163_v48 = vpop.f32.mrb[20].mxu0 }
 0x2bc   : > { %v5165_v49 = vpop.f32.mrb[21].mxu0 }
 0x2bf   : > { %v4035_v50 = vpop.f32.mrb[22].mxu0 }
 0x2c0   : > { %v1694_v51 = vpop.f32.mrb[23].mxu0  ;;  %1743 = vrot.lane.b32.xlu1 %v4035_v50, %s4658_s27 }
 0x2c1   : > { %1741 = vrot.lane.b32.xlu0 %v1694_v51, %s4658_s27 }
 0x2c3   : > { %v4038_v54 = vpop.f32.mrb[24].mxu0 }
 0x2c4   : > { %v1704_v55 = vpop.f32.mrb[25].mxu0  ;;  %1783 = vrot.lane.b32.xlu1 %v1394_v52, %s4657_s2  ;;  %v2079_v52 = vld [vmem:[%s5762_s14 + $0x30] sm:$0xff] }
 0x2c5   : > { %1781 = vrot.lane.b32.xlu0 %v1393_v53, %s4657_s2  ;;  %v2080_v53 = vld [vmem:[%s5762_s14 + $0x38] sm:$0xff] }
 0x2c7   : > { %v4041_v57 = vpop.f32.mrb[26].mxu0 }
 0x2c8   : > { %v1714_v59 = vpop.f32.mrb[27].mxu0  ;;  %1747 = vrot.lane.b32.xlu1 %v4038_v54, %s4658_s27 }
 0x2c9   : > { %1745 = vrot.lane.b32.xlu0 %v1704_v55, %s4658_s27 }
 0x2cb   : > { %v4044_v61 = vpop.f32.mrb[28].mxu0 }
 0x2cc   : > { %v1724_v1 = vpop.f32.mrb[29].mxu0  ;;  %1751 = vrot.lane.b32.xlu1 %v4041_v57, %s4658_s27 }
 0x2cd   : > { %1749 = vrot.lane.b32.xlu0 %v1714_v59, %s4658_s27 }
 0x2cf   : > { %v5175_v56 = vpop.f32.mrb[30].mxu0 }
 0x2d0   : > { %v4091_v58 = vpop.f32.mrb[31].mxu0  ;;  %1755 = vrot.lane.b32.xlu1 %v4044_v61, %s4658_s27  ;;  %v5224_v61 = vpack.c.bf16 %v2080_v53, %v2079_v52  ;;  %v2204_v53 = vld [vmem:[%s5765_s17 + $0x30] sm:$0xff] }
 0x2d1   : > { %1753 = vrot.lane.b32.xlu0 %v1724_v1, %s4658_s27 }
 0x2d3   : > { %v5181_v5 = vpop.f32.mrb[32].mxu0 }
 0x2d4   : > { %v4094_v7 = vpop.f32.mrb[33].mxu0  ;;  %1787 = vrot.lane.b32.xlu1 %v1396_v2, %s4657_s2  ;;  %v2082_v2 = vld [vmem:[%s5762_s14 + $0x48] sm:$0xff] }
 0x2d5   : > { %1785 = vrot.lane.b32.xlu0 %v1395_v4, %s4657_s2 }
 0x2d7   : > { %v5185_v8 = vpop.f32.mrb[34].mxu0 }
 0x2d8   : > { %v4097_v10 = vpop.f32.mrb[35].mxu0 }
 0x332   : > { %v1744_v18 = vpop.permute.xlu1 %1743 }
 0x333   : > { %v1798_v20 = vsel %vm897_vm1, %v4023_v34, %v1744_v18  ;;  %v1742_v21 = vpop.permute.xlu0 %1741  ;;  %v2078_v34 = vld [vmem:[%s5762_s14 + $0x28] sm:$0xff] }
 0x334   : > { %v1797_v24 = vsel %vm897_vm1, %v1654_v36, %v1742_v21  ;;  %v1806_v32 = vsel %vm1005_vm3, %v1798_v20, %v1776_v12  ;;  %v5209_v50 = vpack.c.bf16 %v2078_v34, %v2077_v43  ;;  %v2201_v43 = vld [vmem:[%s5765_s17 + $0x18] sm:$0xff] }
 0x335   : > { %v1805_v26 = vsel %vm1005_vm3, %v1797_v24, %v1774_v13 }
 0x336   : > { %v1784_v15 = vpop.permute.xlu1 %1783  ;;  %4069 = vmatprep.mubr.msk.f32.mxu1 %vm1826_vm9, %v1805_v26 }
 0x337   : > { %4070 = vmatmul.mubr.msk.f32.vlgmr.msra.gmra.mrb[14].mxu1 %vm1826_vm9, %v1806_v32  ;;  %v1782_v36 = vpop.permute.xlu0 %1781 }
 0x338   : > { %4473 = vmatpush3.bf16.msra.mxu1 %v5156_v45 }
 0x339   : > { %4475 = vmatprep.subr.bf16.mxu1 %v5196_v29 }
 0x33a   : > { %v1748_v51 = vpop.permute.xlu1 %1747 }
 0x33b   : > { %v1800_v54 = vsel %vm897_vm1, %v5146_v39, %v1748_v51  ;;  %v1746_v55 = vpop.permute.xlu0 %1745  ;;  %v2081_v39 = vld [vmem:[%s5762_s14 + $0x40] sm:$0xff]  ;;  %v2203_v51 = vld [vmem:[%s5765_s17 + $0x28] sm:$0xff] }
 0x33c   : > { %4477 = vmatpush3.bf16.msra.mxu1 %v5196_v29  ;;  %v1799_v57 = vsel %vm897_vm1, %v5154_v44, %v1746_v55  ;;  %v1808_v58 = vsel %vm1005_vm3, %v1800_v54, %v1780_v14  ;;  %v5242_v12 = vpack.c.bf16 %v2082_v2, %v2081_v39  ;;  %v2205_v54 = vld [vmem:[%s5765_s17 + $0x38] sm:$0xff] }
 0x33d   : > { %v1807_v59 = vsel %vm1005_vm3, %v1799_v57, %v1778_v17  ;;  %4479 = vmatprep.subr.bf16.mxu1 %v5209_v50  ;;  %v2084_v17 = vld [vmem:[%s5762_s14 + $0x58] sm:$0xff]  ;;  %v5315_v55 = vpack.c.bf16 %v2205_v54, %v2204_v53 }
 0x33e   : > { %v1752_v1 = vpop.permute.xlu1 %1751  ;;  %4072 = vmatprep.mubr.msk.f32.mxu1 %vm1826_vm9, %v1807_v59 }
 0x33f   : > { %v1802_v44 = vsel %vm897_vm1, %v5159_v46, %v1752_v1  ;;  %4073 = vmatmul.mubr.msk.f32.gmra.mrb[16].mxu1 %vm1826_vm9, %v1808_v58  ;;  %v1750_v4 = vpop.permute.xlu0 %1749  ;;  %v2083_v46 = vld [vmem:[%s5762_s14 + $0x50] sm:$0xff] }
 0x340   : > { %4481 = vmatpush3.bf16.msra.mxu1 %v5209_v50  ;;  %v1801_v7 = vsel %vm897_vm1, %v5161_v47, %v1750_v4  ;;  %v1810_v14 = vsel %vm1005_vm3, %v1802_v44, %v1784_v15  ;;  %v5255_v18 = vpack.c.bf16 %v2084_v17, %v2083_v46  ;;  %v3608_v4 = vld [vmem:[%s5763_s15] ss:$0 sm:$0xff] }
 0x341   : > { %v1809_v10 = vsel %vm1005_vm3, %v1801_v7, %v1782_v36  ;;  %4483 = vmatprep.subr.bf16.mxu1 %v5224_v61  ;;  %v2202_v36 = vld [vmem:[%s5765_s17 + $0x20] sm:$0xff] }
 0x342   : > { %v1756_v13 = vpop.permute.xlu1 %1755  ;;  %4075 = vmatprep.mubr.msk.f32.mxu1 %vm1826_vm9, %v1809_v10  ;;  %v5305_v52 = vpack.c.bf16 %v2203_v51, %v2202_v36 }
 0x343   : > { %4076 = vmatmul.mubr.msk.f32.gmra.mrb[18].mxu1 %vm1826_vm9, %v1810_v14  ;;  %v1754_v47 = vpop.permute.xlu0 %1753  ;;  %v1804_v21 = vsel %vm897_vm1, %v5163_v48, %v1756_v13  ;;  %v2198_v48 = vld [vmem:[%s5765_s17] sm:$0xff] }
 0x344   : > { %4485 = vmatpush3.bf16.msra.mxu1 %v5224_v61  ;;  %v1803_v62 = vsel %vm897_vm1, %v5165_v49, %v1754_v47  ;;  %v2199_v49 = vld [vmem:[%s5765_s17 + $0x8] sm:$0xff] }
 0x345   : > { %4487 = vmatprep.subr.bf16.mxu1 %v5242_v12 }
 0x346   : > { %v1788_v60 = vpop.permute.xlu1 %1787 }
 0x347   : > { %v1786_v20 = vpop.permute.xlu0 %1785  ;;  %v1812_v15 = vsel %vm1005_vm3, %v1804_v21, %v1788_v60 }
 0x348   : > { %4489 = vmatpush3.bf16.msra.mxu1 %v5242_v12  ;;  %v1811_v24 = vsel %vm1005_vm3, %v1803_v62, %v1786_v20 }
 0x349   : > { %4078 = vmatprep.mubr.msk.f32.mxu1 %vm1826_vm9, %v1811_v24  ;;  %4491 = vmatprep.subr.bf16.mxu1 %v5255_v18 }
 0x34a   : > { %4079 = vmatmul.mubr.msk.f32.gmra.mrb[20].mxu1 %vm1826_vm9, %v1812_v15 }
 0x34b   : > { %4122 = vmatprep.mubr.msk.f32.mxu1 %vm1826_vm9, %v1805_v26  ;;  %v5285_v26 = vpack.c.bf16 %v2199_v49, %v2198_v48 }
 0x34c   : > { %4493 = vmatpush3.bf16.msra.mxu1 %v5255_v18 }
 0x34d   : > { %4510 = vmatprep.subr.bf16.mxu1 %v4653_v3  ;;  %4495 = vmatprep.subr.bf16.mxu0 %v5285_v26 }
 0x34e   : > { %4497 = vmatpush3.bf16.msra.mxu0 %v5285_v26 }
 0x34f   : > { %4123 = vmatmul.mubr.msk.f32.vlgmr.msra.gmra.mrb[22].mxu1 %vm1826_vm9, %v1806_v32  ;;  %v2200_v32 = vld [vmem:[%s5765_s17 + $0x10] sm:$0xff] }
 0x350   : > { %4125 = vmatprep.mubr.msk.f32.mxu1 %vm1826_vm9, %v1807_v59  ;;  %v5294_v34 = vpack.c.bf16 %v2201_v43, %v2200_v32 }
 0x352   : > { %4499 = vmatprep.subr.bf16.mxu0 %v5294_v34 }
 0x353   : > { %4126 = vmatmul.mubr.msk.f32.gmra.mrb[24].mxu1 %vm1826_vm9, %v1808_v58  ;;  %4501 = vmatpush3.bf16.msra.mxu0 %v5294_v34 }
 0x354   : > { %4128 = vmatprep.mubr.msk.f32.mxu1 %vm1826_vm9, %v1809_v10  ;;  %4503 = vmatprep.subr.bf16.mxu0 %v5305_v52 }
 0x357   : > { %4129 = vmatmul.mubr.msk.f32.gmra.mrb[26].mxu1 %vm1826_vm9, %v1810_v14  ;;  %4505 = vmatpush3.bf16.msra.mxu0 %v5305_v52 }
 0x358   : > { %4131 = vmatprep.mubr.msk.f32.mxu1 %vm1826_vm9, %v1811_v24  ;;  %4507 = vmatprep.subr.bf16.mxu0 %v5315_v55 }
 0x35b   : > { %4132 = vmatmul.mubr.msk.f32.gmra.mrb[28].mxu1 %vm1826_vm9, %v1812_v15  ;;  %4509 = vmatpush3.bf16.msra.mxu0 %v5315_v55 }
 0x35c   : > { %4178 = vmatprep.mubr.msk.f32.mxu1 %vm4654_vm0, %v4655_v6  ;;  %4522 = vmatprep.subr.bf16.mxu0 %v4653_v3 }
 0x40a   : > { %v4071_v57 = vpop.f32.mrb[14].mxu1 }
 0x40b   : > { %v1917_v59 = vpop.f32.mrb[15].mxu1  ;;  %v5323_v10 = vadd.f32 %v4071_v57, %v3608_v4 }
 0x40c   : > { %v5325_v13 = vadd.f32 %v3608_v4, %v1917_v59 }
 0x412   : > { %v4074_v1 = vpop.f32.mrb[16].mxu1 }
 0x413   : > { %v1927_v58 = vpop.f32.mrb[17].mxu1  ;;  %v5329_v60 = vadd.f32 %v4074_v1, %v3608_v4 }
 0x414   : > { %v5331_v62 = vadd.f32 %v3608_v4, %v1927_v58 }
 0x416   : > { %v4077_v39 = vpop.f32.mrb[18].mxu1 }
 0x417   : > { %v1937_v2 = vpop.f32.mrb[19].mxu1  ;;  %v5336_v32 = vadd.f32 %v4077_v39, %v3608_v4 }
 0x418   : > { %v5339_v43 = vadd.f32 %v3608_v4, %v1937_v2 }
 0x41d   : > { %v4080_v44 = vpop.f32.mrb[20].mxu1 }
 0x41e   : > { %v1947_v7 = vpop.f32.mrb[21].mxu1  ;;  %v5344_v1 = vadd.f32 %v4080_v44, %v3608_v4 }
 0x41f   : > { %v5347_v58 = vadd.f32 %v3608_v4, %v1947_v7  ;;  %v5360_v4 = vld [vmem:[%s5766_s18] ss:$0 sm:$0xff] }
 0x422   : > { %v4124_v14 = vpop.f32.mrb[22].mxu1 }
 0x423   : > { %v2157_v46 = vadd.f32 %v4124_v14, %v5323_v10  ;;  %v2151_v17 = vpop.f32.mrb[23].mxu1 }
 0x424   : > { %v2152_v47 = vadd.f32 %v2151_v17, %v5325_v13 }
 0x425   : > { %v2191_v24 = vmax.f32 %v2157_v46, 0.0 }
 0x426   : > { %v2190_v20 = vmax.f32 %v2152_v47, 0.0  ;;  %v4127_v21 = vpop.f32.mrb[24].mxu1 }
 0x427   : > { %v2167_v15 = vadd.f32 %v4127_v21, %v5329_v60  ;;  %v2161_v48 = vpop.f32.mrb[25].mxu1 }
 0x428   : > { %v2162_v49 = vadd.f32 %v2161_v48, %v5331_v62  ;;  %4150 = vmatprep.mubr.msk.f32.mxu0 %vm1005_vm3, %v2190_v20 }
 0x429   : > { %4151 = vmatmul.mubr.msk.f32.vlgmr.msra.gmra.mrb[36].mxu0 %vm1005_vm3, %v2191_v24  ;;  %v2193_v53 = vmax.f32 %v2167_v15, 0.0 }
 0x42a   : > { %v2192_v36 = vmax.f32 %v2162_v49, 0.0  ;;  %v4130_v51 = vpop.f32.mrb[26].mxu1 }
 0x42b   : > { %v2177_v54 = vadd.f32 %v4130_v51, %v5336_v32  ;;  %v2171_v57 = vpop.f32.mrb[27].mxu1 }
 0x42c   : > { %v2172_v59 = vadd.f32 %v2171_v57, %v5339_v43  ;;  %4153 = vmatprep.mubr.msk.f32.mxu0 %vm1005_vm3, %v2192_v36 }
 0x42d   : > { %4154 = vmatmul.mubr.msk.f32.gmra.mrb[38].mxu0 %vm1005_vm3, %v2193_v53  ;;  %v2195_v2 = vmax.f32 %v2177_v54, 0.0  ;;  %v1512_v54 = vshrl.u32 %v1397_v11, 7 }
 0x42e   : > { %v2194_v39 = vmax.f32 %v2172_v59, 0.0  ;;  %v4133_v14 = vpop.f32.mrb[28].mxu1 }
 0x42f   : > { %v2187_v46 = vadd.f32 %v4133_v14, %v5344_v1  ;;  %v2181_v17 = vpop.f32.mrb[29].mxu1  ;;  %v1513_v11 = vadd.s32 8, %v1512_v54 }
 0x430   : > { %v2182_v47 = vadd.f32 %v2181_v17, %v5347_v58  ;;  %4156 = vmatprep.mubr.msk.f32.mxu0 %vm1005_vm3, %v2194_v39  ;;  %v3579_v39 = vld [vmem:[%s851_s28] ss:$0 sm:$0xff] }
 0x431   : > { %4157 = vmatmul.mubr.msk.f32.gmra.mrb[40].mxu0 %vm1005_vm3, %v2195_v2  ;;  %v2197_v44 = vmax.f32 %v2187_v46, 0.0  ;;  %vm1520_vm10 = vcmp.eq.s32.totalorder %v1512_v54, %v3579_v39  ;;  %vm1521_vm11 = vcmp.eq.s32.totalorder %v1513_v11, %v3579_v39 }
 0x432   : > { %v2196_v20 = vmax.f32 %v2182_v47, 0.0 }
 0x434   : > { %4159 = vmatprep.mubr.msk.f32.mxu0 %vm1005_vm3, %v2196_v20 }
 0x435   : > { %4160 = vmatmul.mubr.msk.f32.gmra.mrb[42].mxu0 %vm1005_vm3, %v2197_v44 }
 0x436   : > { %4203 = vmatprep.mubr.msk.f32.mxu0 %vm4654_vm0, %v4655_v6 }
 0x4fc   : > { %v4152_v7 = vpop.f32.mrb[36].mxu0 }
 0x4fd   : > { %v5363_v21 = vadd.f32 %v4152_v7, %v5360_v4  ;;  %v2303_v24 = vpop.f32.mrb[37].mxu0 }
 0x4fe   : > { %v5366_v15 = vadd.f32 %v5360_v4, %v2303_v24  ;;  %v3580_v24 = vsel %vm1520_vm10, 1.0, %v4655_v6 }
 0x500   : > { %v4511_v48 = vpack.c.bf16 %v5363_v21, %v5366_v15  ;;  %v4155_v49 = vpop.f32.mrb[38].mxu0 }
 0x501   : > { %v5371_v36 = vadd.f32 %v4155_v49, %v5360_v4  ;;  %v2313_v51 = vpop.f32.mrb[39].mxu0  ;;  %v1514_v49 = vadd.s32 16, %v1512_v54 }
 0x502   : > { %v5378_v53 = vadd.f32 %v5360_v4, %v2313_v51  ;;  %4512 = vmatpush3.bf16.msra.mxu1 %v4511_v48  ;;  %v3583_v48 = vld [vmem:[%s854_s4] ss:$0 sm:$0xff]  ;;  %s859_s4 = scalar_lea.vmem %s5774_s26, %s5805_s6 }
 0x503   : > { %4513 = vmatprep.subr.bf16.mxu1 %v4653_v3  ;;  %vm1522_vm12 = vcmp.eq.s32.totalorder %v1514_v49, %v3579_v39  ;;  %v2446_v39 = vld [vmem:[%s5767_s19] sm:$0xff]  ;;  %v2451_v49 = vld [vmem:[%s5767_s19 + $0x28] sm:$0xff] }
 0x504   : > { %v4514_v57 = vpack.c.bf16 %v5371_v36, %v5378_v53  ;;  %v4158_v59 = vpop.f32.mrb[40].mxu0  ;;  %v3582_v11 = vsel %vm1522_vm12, 1.0, %v4655_v6 }
 0x505   : > { %v5385_v14 = vadd.f32 %v4158_v59, %v5360_v4  ;;  %v2323_v2 = vpop.f32.mrb[41].mxu0  ;;  %v3581_v59 = vsel %vm1521_vm11, 1.0, %v4655_v6  ;;  %v5416_v54 = vmul.f32 %v3583_v48, %v3582_v11  ;;  %v2453_v11 = vld [vmem:[%s5767_s19 + $0x38] sm:$0xff] }
 0x506   : > { %v2324_v46 = vadd.f32 %v5360_v4, %v2323_v2  ;;  %4515 = vmatpush3.bf16.msra.mxu1 %v4514_v57  ;;  %v5404_v57 = vmul.f32 %v3583_v48, %v3580_v24  ;;  %v5409_v2 = vmul.f32 %v3583_v48, %v3581_v59  ;;  %v2449_v24 = vld [vmem:[%s5767_s19 + $0x18] sm:$0xff]  ;;  %v2450_v48 = vld [vmem:[%s5767_s19 + $0x20] sm:$0xff]  ;;  %v2452_v59 = vld [vmem:[%s5767_s19 + $0x30] sm:$0xff] }
 0x507   : > { %4516 = vmatprep.subr.bf16.mxu1 %v4653_v3 }
 0x508   : > { %v4517_v17 = vpack.c.bf16 %v5385_v14, %v2324_v46  ;;  %v4161_v47 = vpop.f32.mrb[42].mxu0 }
 0x509   : > { %v5395_v20 = vadd.f32 %v4161_v47, %v5360_v4  ;;  %v2333_v44 = vpop.f32.mrb[43].mxu0  ;;  %v2448_v47 = vld [vmem:[%s5767_s19 + $0x10] sm:$0xff] }
 0x50a   : > { %v5398_v7 = vadd.f32 %v5360_v4, %v2333_v44  ;;  %4518 = vmatpush3.bf16.msra.mxu1 %v4517_v17  ;;  %v2447_v17 = vld [vmem:[%s5767_s19 + $0x8] sm:$0xff] }
 0x50b   : > { %4519 = vmatprep.subr.bf16.mxu1 %v4653_v3  ;;  %v5433_v44 = vpack.c.bf16 %v2447_v17, %v2446_v39  ;;  %v5459_v39 = vpack.c.bf16 %v2453_v11, %v2452_v59 }
 0x50c   : > { %v4520_v51 = vpack.c.bf16 %v5395_v20, %v5398_v7 }
 0x50d   : > { %4524 = vmatpush3.bf16.msra.mxu0 %v5433_v44 }
 0x50e   : > { %4521 = vmatpush3.bf16.msra.mxu1 %v4520_v51  ;;  %4525 = vmatprep.subr.bf16.mxu0 %v4653_v3  ;;  %v5449_v51 = vpack.c.bf16 %v2451_v49, %v2450_v48 }
 0x511   : > { %4179 = vmatmul.mubr.msk.f32.vlgmr.msra.gmra.mrb[30].mxu1 %vm1005_vm3, %v5404_v57 }
 0x512   : > { %4181 = vmatprep.mubr.msk.f32.mxu1 %vm4654_vm0, %v4655_v6 }
 0x515   : > { %4182 = vmatmul.mubr.msk.f32.gmra.mrb[32].mxu1 %vm1005_vm3, %v5409_v2 }
 0x516   : > { %4184 = vmatprep.mubr.msk.f32.mxu1 %vm4654_vm0, %v4655_v6 }
 0x519   : > { %4185 = vmatmul.mubr.msk.f32.gmra.mrb[34].mxu1 %vm1005_vm3, %v5416_v54 }
 0x51a   : > { %4218 = vmatprep.mubr.msk.f32.mxu1 %vm1539_vm5, %v4949_v23  ;;  %v5439_v23 = vpack.c.bf16 %v2449_v24, %v2448_v47 }
 0x51c   : > { %4527 = vmatpush3.bf16.msra.mxu0 %v5439_v23 }
 0x51d   : > { %4528 = vmatprep.subr.bf16.mxu0 %v4653_v3 }
 0x520   : > { %4530 = vmatpush3.bf16.msra.mxu0 %v5449_v51 }
 0x521   : > { %4531 = vmatprep.subr.bf16.mxu0 %v4653_v3 }
 0x524   : > { %4533 = vmatpush3.bf16.msra.mxu0 %v5459_v39 }
 0x525   : > { %4539 = vmatprep.subr.bf16.mxu0 %v5156_v45 }
 0x5e4   : > { %v2417_v17 = vpop.f32.mrb[30].mxu1 }
 0x5e5   : > { %2434 = vrot.lane.b32.xlu0 %v2417_v17, %s4658_s27  ;;  %v4180_v47 = vpop.f32.mrb[31].mxu1 }
 0x5e8   : > { %v2422_v24 = vpop.f32.mrb[32].mxu1 }
 0x5e9   : > { %2436 = vrot.lane.b32.xlu1 %v2422_v24, %s4658_s27  ;;  %v4183_v48 = vpop.f32.mrb[33].mxu1 }
 0x5ec   : > { %v2427_v49 = vpop.f32.mrb[34].mxu1 }
 0x5ed   : > { %2728 = vrot.lane.b32.xlu1 %v5366_v15, %s4657_s2  ;;  %2438 = vrot.lane.b32.xlu0 %v2427_v49, %s4658_s27  ;;  %v4186_v59 = vpop.f32.mrb[35].mxu1 }
 0x5f1   : > { %2732 = vrot.lane.b32.xlu1 %v5378_v53, %s4657_s2  ;;  %2730 = vrot.lane.b32.xlu0 %v5363_v21, %s4657_s2 }
 0x5f5   : > { %2736 = vrot.lane.b32.xlu1 %v2324_v46, %s4657_s2  ;;  %2734 = vrot.lane.b32.xlu0 %v5371_v36, %s4657_s2 }
 0x5f9   : > { %2738 = vrot.lane.b32.xlu0 %v5385_v14, %s4657_s2 }
 0x657   : > { %v2435_v11 = vpop.permute.xlu0 %2434 }
 0x658   : > { %v2443_v15 = vsel %vm897_vm1, %v4973_v63, %v2435_v11 }
 0x659   : > { %4204 = vmatmul.mubr.msk.f32.vlgmr.msra.gmra.mrb[44].mxu0 %vm1005_vm3, %v2443_v15 }
 0x65a   : > { %4206 = vmatprep.mubr.msk.f32.mxu0 %vm4654_vm0, %v4655_v6  ;;  %4541 = vmatpush3.bf16.msra.mxu0 %v5156_v45 }
 0x65b   : > { %v2437_v21 = vpop.permute.xlu1 %2436  ;;  %4543 = vmatprep.subr.bf16.mxu0 %v5196_v29 }
 0x65c   : > { %v2444_v36 = vsel %vm897_vm1, %v4975_v0, %v2437_v21  ;;  %v3612_v0 = vld [vmem:[%s5768_s20] ss:$0 sm:$0xff] }
 0x65d   : > { %4207 = vmatmul.mubr.msk.f32.gmra.mrb[46].mxu0 %vm1005_vm3, %v2444_v36  ;;  %v5519_v46 = vadd.f32 %v3612_v0, %v5185_v8 }
 0x65e   : > { %4209 = vmatprep.mubr.msk.f32.mxu0 %vm4654_vm0, %v4655_v6  ;;  %4545 = vmatpush3.bf16.msra.mxu0 %v5196_v29  ;;  %v5507_v29 = vadd.f32 %v3612_v0, %v5175_v56 }
 0x65f   : > { %v2439_v63 = vpop.permute.xlu0 %2438  ;;  %4547 = vmatprep.subr.bf16.mxu0 %v5209_v50  ;;  %v2729_v48 = vpop.permute.xlu1 %2728 }
 0x660   : > { %v2445_v53 = vsel %vm897_vm1, %v4979_v9, %v2439_v63 }
 0x661   : > { %4210 = vmatmul.mubr.msk.f32.gmra.mrb[48].mxu0 %vm1005_vm3, %v2445_v53 }
 0x662   : > { %4549 = vmatpush3.bf16.msra.mxu0 %v5209_v50  ;;  %v5510_v50 = vadd.f32 %v3612_v0, %v5181_v5 }
 0x663   : > { %4551 = vmatprep.subr.bf16.mxu0 %v5224_v61  ;;  %v2731_v24 = vpop.permute.xlu0 %2730  ;;  %v2733_v59 = vpop.permute.xlu1 %2732 }
 0x666   : > { %4553 = vmatpush3.bf16.msra.mxu0 %v5224_v61 }
 0x667   : > { %4555 = vmatprep.subr.bf16.mxu0 %v5242_v12  ;;  %v2735_v49 = vpop.permute.xlu0 %2734  ;;  %v2737_v15 = vpop.permute.xlu1 %2736 }
 0x66a   : > { %4557 = vmatpush3.bf16.msra.mxu0 %v5242_v12 }
 0x66b   : > { %4559 = vmatprep.subr.bf16.mxu0 %v5255_v18  ;;  %v2739_v11 = vpop.permute.xlu0 %2738 }
 0x66e   : > { %4561 = vmatpush3.bf16.msra.mxu0 %v5255_v18 }
 0x66f   : > { %4563 = vmatprep.subr.bf16.mxu0 %v5285_v26 }
 0x72c   : > { %v2529_v9 = vpop.f32.mrb[44].mxu0 }
 0x72d   : > { %v4205_v45 = vpop.f32.mrb[45].mxu0  ;;  %v5513_v12 = vadd.f32 %v2529_v9, %v5507_v29 }
 0x730   : > { %v2534_v61 = vpop.f32.mrb[46].mxu0 }
 0x731   : > { %v5516_v18 = vadd.f32 %v2534_v61, %v5510_v50  ;;  %v4208_v14 = vpop.f32.mrb[47].mxu0 }
 0x733   : > { %v4534_v17 = vpack.c.bf16 %v5516_v18, %v5513_v12 }
 0x734   : > { %v2539_v47 = vpop.f32.mrb[48].mxu0 }
 0x735   : > { %v5524_v56 = vadd.f32 %v2539_v47, %v5519_v46  ;;  %v4211_v5 = vpop.f32.mrb[49].mxu0  ;;  %4535 = vmatprep.subr.bf16.mxu1 %v4534_v17 }
 0x736   : > { %4537 = vmatpush3.bf16.msra.mxu1 %v4534_v17 }
 0x737   : > { %4216 = vmatprep.subr.mxu1 %v5524_v56 }
 0x73a   : > { %4217 = vmatpush3.msra.mxu1 %v5524_v56 }
 0x73b   : > { %4219 = vmatmul.mubr.msk.f32.vlgmr.msra.gmra.mrb[36].mxu1 %vm1539_vm5, %v5000_v19  ;;  %4578 = vmatprep.subr.bf16.mxu1 %v4653_v3 }
 0x73c   : > { %4221 = vmatprep.mubr.msk.f32.mxu1 %vm1539_vm5, %v4991_v16 }
 0x73f   : > { %4222 = vmatmul.mubr.msk.f32.gmra.mrb[38].mxu1 %vm1539_vm5, %v5012_v22 }
 0x740   : > { %4224 = vmatprep.mubr.msk.f32.mxu1 %vm1539_vm5, %v5015_v25 }
 0x743   : > { %4225 = vmatmul.mubr.msk.f32.gmra.mrb[40].mxu1 %vm1539_vm5, %v5024_v27 }
 0x744   : > { %4227 = vmatprep.mubr.msk.f32.mxu1 %vm1539_vm5, %v5027_v28 }
 0x747   : > { %4228 = vmatmul.mubr.msk.f32.gmra.mrb[42].mxu1 %vm1539_vm5, %v5036_v30 }
 0x748   : > { %4230 = vmatprep.mubr.msk.f32.mxu1 %vm1539_vm5, %v5039_v31 }
 0x74b   : > { %4231 = vmatmul.mubr.msk.f32.gmra.mrb[44].mxu1 %vm1539_vm5, %v5048_v33 }
 0x74c   : > { %4233 = vmatprep.mubr.msk.f32.mxu1 %vm1539_vm5, %v5051_v35 }
 0x74f   : > { %4234 = vmatmul.mubr.msk.f32.gmra.mrb[46].mxu1 %vm1539_vm5, %v5060_v37 }
 0x750   : > { %4236 = vmatprep.mubr.msk.f32.mxu1 %vm1539_vm5, %v5063_v38 }
 0x753   : > { %4237 = vmatmul.mubr.msk.f32.gmra.mrb[48].mxu1 %vm1539_vm5, %v5072_v40 }
 0x754   : > { %4239 = vmatprep.mubr.msk.f32.mxu1 %vm1539_vm5, %v5075_v41 }
 0x757   : > { %4240 = vmatmul.mubr.msk.f32.gmra.mrb[50].mxu1 %vm1539_vm5, %v5083_v42 }
 0x758   : > { %4322 = vmatprep.mubr.msk.f32.mxu1 %vm4654_vm0, %v4655_v6 }
 0x80e   : > { %v4220_v16 = vpop.f32.mrb[36].mxu1 }
 0x80f   : > { %v2609_v19 = vpop.f32.mrb[37].mxu1 }
 0x812   : > { %v4223_v22 = vpop.f32.mrb[38].mxu1 }
 0x813   : > { %v2619_v25 = vpop.f32.mrb[39].mxu1 }
 0x816   : > { %v4226_v27 = vpop.f32.mrb[40].mxu1 }
 0x817   : > { %v2629_v28 = vpop.f32.mrb[41].mxu1 }
 0x81a   : > { %v4229_v30 = vpop.f32.mrb[42].mxu1 }
 0x81b   : > { %v2639_v31 = vpop.f32.mrb[43].mxu1 }
 0x81e   : > { %v4232_v33 = vpop.f32.mrb[44].mxu1 }
 0x81f   : > { %2698 = vrot.lane.b32.xlu0 %v4232_v33, %s4658_s27  ;;  %v2649_v35 = vpop.f32.mrb[45].mxu1 }
 0x820   : > { %2696 = vrot.lane.b32.xlu1 %v2649_v35, %s4658_s27 }
 0x822   : > { %v4235_v37 = vpop.f32.mrb[46].mxu1 }
 0x823   : > { %2702 = vrot.lane.b32.xlu0 %v4235_v37, %s4658_s27  ;;  %v2659_v38 = vpop.f32.mrb[47].mxu1 }
 0x824   : > { %2700 = vrot.lane.b32.xlu1 %v2659_v38, %s4658_s27 }
 0x826   : > { %v4238_v40 = vpop.f32.mrb[48].mxu1 }
 0x827   : > { %2706 = vrot.lane.b32.xlu0 %v4238_v40, %s4658_s27  ;;  %v2669_v41 = vpop.f32.mrb[49].mxu1 }
 0x828   : > { %2704 = vrot.lane.b32.xlu1 %v2669_v41, %s4658_s27 }
 0x82a   : > { %v4241_v42 = vpop.f32.mrb[50].mxu1 }
 0x82b   : > { %2710 = vrot.lane.b32.xlu0 %v4241_v42, %s4658_s27  ;;  %v2679_v8 = vpop.f32.mrb[51].mxu1 }
 0x82c   : > { %2708 = vrot.lane.b32.xlu1 %v2679_v8, %s4658_s27 }
 0x82f   : > { %2742 = vrot.lane.b32.xlu0 %v5395_v20, %s4657_s2 }
 0x830   : > { %2740 = vrot.lane.b32.xlu1 %v5398_v7, %s4657_s2 }
 0x891   : > { %v2699_v21 = vpop.permute.xlu0 %2698 }
 0x892   : > { %v2753_v36 = vsel %vm897_vm1, %v4220_v16, %v2699_v21  ;;  %v2697_v63 = vpop.permute.xlu1 %2696 }
 0x893   : > { %v2752_v53 = vsel %vm897_vm1, %v2609_v19, %v2697_v63  ;;  %v2761_v9 = vsel %vm1005_vm3, %v2753_v36, %v2731_v24 }
 0x894   : > { %v2760_v0 = vsel %vm1005_vm3, %v2752_v53, %v2729_v48 }
 0x895   : > { %4266 = vmatprep.mubr.msk.f32.mxu0 %vm1826_vm9, %v2760_v0  ;;  %v2703_v20 = vpop.permute.xlu0 %2702 }
 0x896   : > { %v2755_v7 = vsel %vm897_vm1, %v4223_v22, %v2703_v20  ;;  %4267 = vmatmul.mubr.msk.f32.vlgmr.msra.gmra.mrb[50].mxu0 %vm1826_vm9, %v2761_v9  ;;  %v2701_v45 = vpop.permute.xlu1 %2700 }
 0x897   : > { %v2754_v61 = vsel %vm897_vm1, %v2619_v25, %v2701_v45  ;;  %4565 = vmatpush3.bf16.msra.mxu0 %v5285_v26  ;;  %v2763_v47 = vsel %vm1005_vm3, %v2755_v7, %v2735_v49 }
 0x898   : > { %v2762_v14 = vsel %vm1005_vm3, %v2754_v61, %v2733_v59  ;;  %4567 = vmatprep.subr.bf16.mxu0 %v5294_v34 }
 0x899   : > { %4269 = vmatprep.mubr.msk.f32.mxu0 %vm1826_vm9, %v2762_v14  ;;  %v2707_v17 = vpop.permute.xlu0 %2706 }
 0x89a   : > { %v2757_v5 = vsel %vm897_vm1, %v4226_v27, %v2707_v17  ;;  %4270 = vmatmul.mubr.msk.f32.gmra.mrb[52].mxu0 %vm1826_vm9, %v2763_v47  ;;  %v2705_v16 = vpop.permute.xlu1 %2704 }
 0x89b   : > { %v2756_v19 = vsel %vm897_vm1, %v2629_v28, %v2705_v16  ;;  %4569 = vmatpush3.bf16.msra.mxu0 %v5294_v34  ;;  %v2765_v25 = vsel %vm1005_vm3, %v2757_v5, %v2739_v11 }
 0x89c   : > { %v2764_v26 = vsel %vm1005_vm3, %v2756_v19, %v2737_v15  ;;  %4571 = vmatprep.subr.bf16.mxu0 %v5305_v52 }
 0x89d   : > { %4272 = vmatprep.mubr.msk.f32.mxu0 %vm1826_vm9, %v2764_v26  ;;  %v2711_v22 = vpop.permute.xlu0 %2710 }
 0x89e   : > { %4273 = vmatmul.mubr.msk.f32.gmra.mrb[54].mxu0 %vm1826_vm9, %v2765_v25  ;;  %v2709_v33 = vpop.permute.xlu1 %2708  ;;  %v2759_v35 = vsel %vm897_vm1, %v4229_v30, %v2711_v22 }
 0x89f   : > { %4573 = vmatpush3.bf16.msra.mxu0 %v5305_v52  ;;  %v2758_v28 = vsel %vm897_vm1, %v2639_v31, %v2709_v33 }
 0x8a0   : > { %4575 = vmatprep.subr.bf16.mxu0 %v5315_v55 }
 0x8a1   : > { %v2743_v27 = vpop.permute.xlu0 %2742 }
 0x8a2   : > { %v2741_v34 = vpop.permute.xlu1 %2740  ;;  %v2767_v38 = vsel %vm1005_vm3, %v2759_v35, %v2743_v27 }
 0x8a3   : > { %v2766_v37 = vsel %vm1005_vm3, %v2758_v28, %v2741_v34  ;;  %4577 = vmatpush3.bf16.msra.mxu0 %v5315_v55 }
 0x8a4   : > { %4275 = vmatprep.mubr.msk.f32.mxu0 %vm1826_vm9, %v2766_v37  ;;  %4590 = vmatprep.subr.bf16.mxu0 %v4653_v3 }
 0x8a5   : > { %4276 = vmatmul.mubr.msk.f32.gmra.mrb[56].mxu0 %vm1826_vm9, %v2767_v38 }
 0x969   : > { %v4268_v52 = vpop.f32.mrb[50].mxu0 }
 0x96a   : > { %v2864_v40 = vadd.f32 %v4268_v52, %v5323_v10  ;;  %v2858_v41 = vpop.f32.mrb[51].mxu0 }
 0x96b   : > { %v2859_v31 = vadd.f32 %v2858_v41, %v5325_v13 }
 0x96c   : > { %v2898_v8 = vmax.f32 %v2864_v40, 0.0 }
 0x96d   : > { %v2897_v42 = vmax.f32 %v2859_v31, 0.0  ;;  %v4271_v30 = vpop.f32.mrb[52].mxu0 }
 0x96e   : > { %v2874_v24 = vadd.f32 %v4271_v30, %v5329_v60  ;;  %v2868_v55 = vpop.f32.mrb[53].mxu0  ;;  %v3323_v30 = vld [vmem:[%s5772_s24 + $0x10] sm:$0xff] }
 0x96f   : > { %v2869_v48 = vadd.f32 %v2868_v55, %v5331_v62  ;;  %4294 = vmatprep.mubr.msk.f32.mxu0 %vm1005_vm3, %v2897_v42  ;;  %v3322_v42 = vld [vmem:[%s5772_s24 + $0x8] sm:$0xff] }
 0x970   : > { %4295 = vmatmul.mubr.msk.f32.vlgmr.msra.gmra.mrb[58].mxu0 %vm1005_vm3, %v2898_v8  ;;  %v2900_v10 = vmax.f32 %v2874_v24, 0.0  ;;  %v3324_v24 = vld [vmem:[%s5772_s24 + $0x18] sm:$0xff] }
 0x971   : > { %v2899_v49 = vmax.f32 %v2869_v48, 0.0  ;;  %v4274_v59 = vpop.f32.mrb[54].mxu0  ;;  %4592 = vmatpush3.bf16.msra.mxu0 %v5433_v44  ;;  %v4612_v55 = vpack.c.bf16 %v3324_v24, %v3323_v30  ;;  %v3325_v48 = vld [vmem:[%s5772_s24 + $0x20] sm:$0xff] }
 0x972   : > { %v2884_v11 = vadd.f32 %v4274_v59, %v5336_v32  ;;  %v2878_v13 = vpop.f32.mrb[55].mxu0  ;;  %4593 = vmatprep.subr.bf16.mxu0 %v4653_v3 }
 0x973   : > { %v2879_v15 = vadd.f32 %v2878_v13, %v5339_v43  ;;  %4297 = vmatprep.mubr.msk.f32.mxu0 %vm1005_vm3, %v2899_v49  ;;  %v3326_v49 = vld [vmem:[%s5772_s24 + $0x28] sm:$0xff] }
 0x974   : > { %4298 = vmatmul.mubr.msk.f32.gmra.mrb[60].mxu0 %vm1005_vm3, %v2900_v10  ;;  %v2902_v62 = vmax.f32 %v2884_v11, 0.0  ;;  %v4615_v59 = vpack.c.bf16 %v3326_v49, %v3325_v48 }
 0x975   : > { %v2901_v60 = vmax.f32 %v2879_v15, 0.0  ;;  %4595 = vmatpush3.bf16.msra.mxu0 %v5439_v23 }
 0x976   : > { %4596 = vmatprep.subr.bf16.mxu0 %v4653_v3 }
 0x977   : > { %4300 = vmatprep.mubr.msk.f32.mxu0 %vm1005_vm3, %v2901_v60 }
 0x978   : > { %v4277_v44 = vpop.f32.mrb[56].mxu0  ;;  %4301 = vmatmul.mubr.msk.f32.gmra.mrb[62].mxu0 %vm1005_vm3, %v2902_v62 }
 0x979   : > { %v2894_v32 = vadd.f32 %v4277_v44, %v5344_v1  ;;  %v2888_v21 = vpop.f32.mrb[57].mxu0  ;;  %4598 = vmatpush3.bf16.msra.mxu0 %v5449_v51 }
 0x97a   : > { %v2889_v43 = vadd.f32 %v2888_v21, %v5347_v58  ;;  %4599 = vmatprep.subr.bf16.mxu0 %v4653_v3  ;;  %v3328_v21 = vld [vmem:[%s5772_s24 + $0x38] sm:$0xff] }
 0x97b   : > { %v2904_v63 = vmax.f32 %v2894_v32, 0.0 }
 0x97c   : > { %v2903_v36 = vmax.f32 %v2889_v43, 0.0  ;;  %v3674_v43 = vld [vmem:[%s5771_s23] ss:$0 sm:$0xff] }
 0x97d   : > { %4601 = vmatpush3.bf16.msra.mxu0 %v5459_v39 }
 0x97e   : > { %4303 = vmatprep.mubr.msk.f32.mxu0 %vm1005_vm3, %v2903_v36  ;;  %4608 = vmatprep.subr.bf16.mxu0 %v4653_v3 }
 0x97f   : > { %4304 = vmatmul.mubr.msk.f32.gmra.mrb[64].mxu0 %vm1005_vm3, %v2904_v63 }
 0x980   : > { %4347 = vmatprep.mubr.msk.f32.mxu0 %vm4654_vm0, %v4655_v6 }
 0xa43   : > { %v4296_v1 = vpop.f32.mrb[58].mxu0 }
 0xa44   : > { %v3001_v23 = vadd.f32 %v4296_v1, %v5360_v4  ;;  %v2995_v51 = vpop.f32.mrb[59].mxu0 }
 0xa45   : > { %v2996_v58 = vadd.f32 %v5360_v4, %v2995_v51 }
 0xa47   : > { %v4579_v53 = vpack.c.bf16 %v3001_v23, %v2996_v58  ;;  %v4299_v0 = vpop.f32.mrb[60].mxu0 }
 0xa48   : > { %v3011_v9 = vadd.f32 %v4299_v0, %v5360_v4  ;;  %v3005_v39 = vpop.f32.mrb[61].mxu0 }
 0xa49   : > { %v3006_v20 = vadd.f32 %v5360_v4, %v3005_v39  ;;  %4580 = vmatpush3.bf16.msra.mxu1 %v4579_v53 }
 0xa4a   : > { %4581 = vmatprep.subr.bf16.mxu1 %v4653_v3 }
 0xa4b   : > { %v4582_v7 = vpack.c.bf16 %v3011_v9, %v3006_v20  ;;  %v4302_v45 = vpop.f32.mrb[62].mxu0 }
 0xa4c   : > { %v3021_v61 = vadd.f32 %v4302_v45, %v5360_v4  ;;  %v3015_v14 = vpop.f32.mrb[63].mxu0 }
 0xa4d   : > { %v3016_v17 = vadd.f32 %v5360_v4, %v3015_v14  ;;  %4583 = vmatpush3.bf16.msra.mxu1 %v4582_v7  ;;  %v3678_v7 = vld [vmem:[%s5773_s25] ss:$0 sm:$0xff] }
 0xa4e   : > { %4584 = vmatprep.subr.bf16.mxu1 %v4653_v3 }
 0xa4f   : > { %v4585_v47 = vpack.c.bf16 %v3021_v61, %v3016_v17 }
 0xa51   : > { %4586 = vmatpush3.bf16.msra.mxu1 %v4585_v47 }
 0xa52   : > { %v4305_v5 = vpop.f32.mrb[64].mxu0  ;;  %4587 = vmatprep.subr.bf16.mxu1 %v4653_v3 }
 0xa53   : > { %v3031_v16 = vadd.f32 %v4305_v5, %v5360_v4  ;;  %v3025_v19 = vpop.f32.mrb[65].mxu0 }
 0xa54   : > { %v3026_v26 = vadd.f32 %v5360_v4, %v3025_v19  ;;  %v3218_v4 = vld [vmem:[%s5770_s22] sm:$0xff] }
 0xa56   : > { %v4588_v22 = vpack.c.bf16 %v3031_v16, %v3026_v26 }
 0xa58   : > { %4589 = vmatpush3.bf16.msra.mxu1 %v4588_v22 }
 0xa59   : > { %4602 = vmatprep.subr.bf16.mxu1 %v4653_v3 }
 0xa5b   : > { %4323 = vmatmul.mubr.msk.f32.vlgmr.msra.gmra.mrb[52].mxu1 %vm1005_vm3, %v5404_v57  ;;  %v3219_v57 = vld [vmem:[%s5770_s22 + $0x8] sm:$0xff] }
 0xa5c   : > { %4325 = vmatprep.mubr.msk.f32.mxu1 %vm4654_vm0, %v4655_v6  ;;  %v4603_v25 = vpack.c.bf16 %v3219_v57, %v3218_v4 }
 0xa5e   : > { %4604 = vmatpush3.bf16.msra.mxu1 %v4603_v25 }
 0xa5f   : > { %4326 = vmatmul.mubr.msk.f32.gmra.mrb[54].mxu1 %vm1005_vm3, %v5409_v2  ;;  %4605 = vmatprep.subr.bf16.mxu1 %v4653_v3 }
 0xa60   : > { %4328 = vmatprep.mubr.msk.f32.mxu1 %vm4654_vm0, %v4655_v6 }
 0xa63   : > { %4329 = vmatmul.mubr.msk.f32.gmra.mrb[56].mxu1 %vm1005_vm3, %v5416_v54 }
 0xa64   : > { %4364 = vmatprep.mubr.msk.f32.mxu1 %vm4654_vm0, %v4655_v6 }
 0xb2e   : > { %v3100_v33 = vpop.f32.mrb[52].mxu1 }
 0xb2f   : > { %3117 = vrot.lane.b32.xlu1 %v3100_v33, %s4658_s27  ;;  %v4324_v2 = vpop.f32.mrb[53].mxu1 }
 0xb32   : > { %v3105_v54 = vpop.f32.mrb[54].mxu1 }
 0xb33   : > { %3119 = vrot.lane.b32.xlu0 %v3105_v54, %s4658_s27  ;;  %v4327_v27 = vpop.f32.mrb[55].mxu1 }
 0xb36   : > { %v3110_v28 = vpop.f32.mrb[56].mxu1 }
 0xb37   : > { %3121 = vrot.lane.b32.xlu1 %v3110_v28, %s4658_s27  ;;  %v4330_v34 = vpop.f32.mrb[57].mxu1 }
 0xba1   : > { %v3118_v35 = vpop.permute.xlu1 %3117 }
 0xba2   : > { %v3126_v37 = vsel %vm897_vm1, %v5513_v12, %v3118_v35  ;;  %v3220_v12 = vld [vmem:[%s5770_s22 + $0x10] sm:$0xff] }
 0xba3   : > { %4348 = vmatmul.mubr.msk.f32.vlgmr.msra.gmra.mrb[66].mxu0 %vm1005_vm3, %v3126_v37 }
 0xba4   : > { %4350 = vmatprep.mubr.msk.f32.mxu0 %vm4654_vm0, %v4655_v6 }
 0xba5   : > { %v3120_v38 = vpop.permute.xlu0 %3119 }
 0xba6   : > { %v3127_v52 = vsel %vm897_vm1, %v5516_v18, %v3120_v38  ;;  %v3221_v18 = vld [vmem:[%s5770_s22 + $0x18] sm:$0xff] }
 0xba7   : > { %4351 = vmatmul.mubr.msk.f32.gmra.mrb[68].mxu0 %vm1005_vm3, %v3127_v52  ;;  %v4606_v31 = vpack.c.bf16 %v3221_v18, %v3220_v12 }
 0xba8   : > { %4353 = vmatprep.mubr.msk.f32.mxu0 %vm4654_vm0, %v4655_v6 }
 0xba9   : > { %v3122_v40 = vpop.permute.xlu1 %3121  ;;  %4607 = vmatpush3.bf16.msra.mxu1 %v4606_v31 }
 0xbaa   : > { %v3128_v41 = vsel %vm897_vm1, %v5524_v56, %v3122_v40  ;;  %4620 = vmatprep.subr.bf16.mxu1 %v4653_v3  ;;  %v3321_v56 = vld [vmem:[%s5772_s24] sm:$0xff] }
 0xbab   : > { %4354 = vmatmul.mubr.msk.f32.gmra.mrb[70].mxu0 %vm1005_vm3, %v3128_v41  ;;  %v4609_v8 = vpack.c.bf16 %v3322_v42, %v3321_v56 }
 0xbac   : > { %4389 = vmatprep.mubr.msk.f32.mxu0 %vm4654_vm0, %v4655_v6 }
 0xbad   : > { %4610 = vmatpush3.bf16.msra.mxu0 %v4609_v8 }
 0xbae   : > { %4611 = vmatprep.subr.bf16.mxu0 %v4653_v3 }
 0xbb1   : > { %4613 = vmatpush3.bf16.msra.mxu0 %v4612_v55 }
 0xbb2   : > { %4614 = vmatprep.subr.bf16.mxu0 %v4653_v3 }
 0xbb5   : > { %4616 = vmatpush3.bf16.msra.mxu0 %v4615_v59 }
 0xbb6   : > { %4617 = vmatprep.subr.bf16.mxu0 %v4653_v3 }
 0xc76   : > { %v3204_v10 = vpop.f32.mrb[66].mxu0 }
 0xc77   : > { %v3205_v11 = vadd.f32 %v3204_v10, %v5507_v29  ;;  %v4349_v13 = vpop.f32.mrb[67].mxu0 }
 0xc79   : > { %4365 = vmatmul.mubr.msk.f32.vlgmr.msra.gmra.mrb[58].mxu1 %vm897_vm1, %v3205_v11 }
 0xc7a   : > { %v3209_v15 = vpop.f32.mrb[68].mxu0  ;;  %4367 = vmatprep.mubr.msk.f32.mxu1 %vm4654_vm0, %v4655_v6  ;;  %4624 = vmatpush3.bf16.msra.mxu1 %v4609_v8 }
 0xc7b   : > { %v3210_v60 = vadd.f32 %v3209_v15, %v5510_v50  ;;  %v4352_v62 = vpop.f32.mrb[69].mxu0  ;;  %4621 = vmatprep.subr.bf16.mxu1 %v4653_v3  ;;  %v3327_v50 = vld [vmem:[%s5772_s24 + $0x30] sm:$0xff] }
 0xc7d   : > { %4368 = vmatmul.mubr.msk.f32.gmra.mrb[60].mxu1 %vm897_vm1, %v3210_v60 }
 0xc7e   : > { %v3214_v44 = vpop.f32.mrb[70].mxu0  ;;  %4370 = vmatprep.mubr.msk.f32.mxu1 %vm4654_vm0, %v4655_v6  ;;  %4625 = vmatpush3.bf16.msra.mxu1 %v4612_v55 }
 0xc7f   : > { %v3215_v29 = vadd.f32 %v3214_v44, %v5519_v46  ;;  %v4355_v32 = vpop.f32.mrb[71].mxu0  ;;  %4622 = vmatprep.subr.bf16.mxu1 %v4653_v3  ;;  %v4618_v46 = vpack.c.bf16 %v3328_v21, %v3327_v50 }
 0xc81   : > { %4371 = vmatmul.mubr.msk.f32.gmra.mrb[62].mxu1 %vm897_vm1, %v3215_v29  ;;  %4619 = vmatpush3.bf16.msra.mxu0 %v4618_v46 }
 0xc82   : > { %4626 = vmatpush3.bf16.msra.mxu1 %v4615_v59  ;;  %4392 = vmatprep.mubr.msk.f32.mxu1 %vm4654_vm0, %v4655_v6 }
 0xc83   : > { %4623 = vmatprep.subr.bf16.mxu1 %v4653_v3 }
 0xc86   : > { %4627 = vmatpush3.bf16.msra.mxu1 %v4618_v46 }
 0xd4c   : > { %v3304_v36 = vpop.f32.mrb[58].mxu1 }
 0xd4d   : > { %v3305_v63 = vadd.f32 %v3674_v43, %v3304_v36  ;;  %v4366_v1 = vpop.f32.mrb[59].mxu1 }
 0xd4f   : > { %v3318_v3 = vmax.f32 %v3305_v63, 0.0 }
 0xd50   : > { %v3309_v23 = vpop.f32.mrb[60].mxu1 }
 0xd51   : > { %v3310_v51 = vadd.f32 %v3674_v43, %v3309_v23  ;;  %v4369_v58 = vpop.f32.mrb[61].mxu1  ;;  %4390 = vmatmul.mubr.msk.f32.vlgmr.msra.gmra.mrb[72].mxu0 %vm1005_vm3, %v3318_v3 }
 0xd53   : > { %v3319_v53 = vmax.f32 %v3310_v51, 0.0 }
 0xd54   : > { %v3314_v0 = vpop.f32.mrb[62].mxu1 }
 0xd55   : > { %v3315_v9 = vadd.f32 %v3674_v43, %v3314_v0  ;;  %v4372_v39 = vpop.f32.mrb[63].mxu1  ;;  %4393 = vmatmul.mubr.msk.f32.vlgmr.msra.gmra.mrb[64].mxu1 %vm1005_vm3, %v3319_v53 }
 0xd56   : > { %4395 = vmatprep.mubr.msk.f32.mxu1 %vm4654_vm0, %v4655_v6 }
 0xd57   : > { %v3320_v20 = vmax.f32 %v3315_v9, 0.0 }
 0xd59   : > { %4396 = vmatmul.mubr.msk.f32.gmra.mrb[66].mxu1 %vm1005_vm3, %v3320_v20 }
 0xe24   : > { %v3411_v45 = vpop.f32.mrb[72].mxu0 }
 0xe25   : > { %v3412_v61 = vadd.f32 %v3678_v7, %v3411_v45  ;;  %v4391_v14 = vpop.f32.mrb[73].mxu0 }
 0xe27   : > { %3425 = vst [vmem:[%s859_s4] sm:$0xff] %v3412_v61 }
 0xe28   : > { %v3416_v17 = vpop.f32.mrb[64].mxu1 }
 0xe29   : > { %v3417_v47 = vadd.f32 %v3678_v7, %v3416_v17  ;;  %v4394_v5 = vpop.f32.mrb[65].mxu1 }
 0xe2b   : > { %3426 = vst [vmem:[%s859_s4 + $0x8] sm:$0xff] %v3417_v47 }
 0xe2c   : > { %v3421_v6 = vpop.f32.mrb[66].mxu1 }
 0xe2d   : > { %v3422_v16 = vadd.f32 %v3678_v7, %v3421_v6  ;;  %v4397_v19 = vpop.f32.mrb[67].mxu1 }
 0xe2f   : > { %3427 = vst [vmem:[%s859_s4 + $0x10] sm:$0xff] %v3422_v16 }
 0xe30 PF: > { %s5806_s29 = sld [smem:[#allocation2_spill]] }
 0xe36   : > { %s36_s27 = sadd.s32 1, %s5806_s29  }
 0xe37   : > { %p33_p4 = scmp.ge.s32.totalorder %s36_s27, 4  }
 0xe39   :  { %35 = sbr.rel (!%p33_p4) target bundleno = 12 (0xc), region = 166 }

</bundles_post_ra>
